<compile_context>
chip_gen: v7x
topology: tpu7x:2x2x1
jax: 0.10.0
libtpu: 0.0.40
codegen_flags: <defaults>
</compile_context>

<pallas_src>
import functools
import math

import jax
import jax.numpy as jnp
from jax import lax
from jax.experimental import pallas as pl
from jax.experimental.pallas import tpu as pltpu


def _round_up(v: int, m: int) -> int:
    return -(-v // m) * m


def _fused_lstm2_kernel(x_ref, wih1_ref, whh1_ref, wih2_ref, whh2_ref,
                        b1_ref, b2_ref, out_ref,
                        h1_s, c1_s, h2_s, c2_s, h1_chunk, pg1_s, pg2_s,
                        *, ts: int, bp: int, h: int):
    """Two wavefront-pipelined LSTM layers, TS time steps per grid iteration.

    x_ref    : (TS*Bp, H)  bf16  inputs for time chunk `step` (time-major rows)
    wih*_ref : (H, 4H)     bf16  W_ih^T per layer (gate order i,f,g,o)
    whh*_ref : (H, 4H)     bf16  W_hh^T per layer
    b*_ref   : (1, 4H)     f32   b_ih + b_hh per layer
    out_ref  : (TS*Bp, H)        layer-2 outputs for chunk `step - 1`
    h*/c*_s  : (Bp, H)     f32   persistent hidden/cell state per layer
    h1_chunk : (TS*Bp, H)  bf16  layer-1 outputs of the current chunk
    pg*_s    : (TS*Bp, 4H) f32   per-chunk pre-gates per layer
    """
    step = pl.program_id(0)

    @pl.when(step == 0)
    def _():
        h1_s[...] = jnp.zeros_like(h1_s)
        c1_s[...] = jnp.zeros_like(c1_s)

    @pl.when(step == 1)
    def _():
        # Layer 2 starts its real work one grid step later (wavefront).
        h2_s[...] = jnp.zeros_like(h2_s)
        c2_s[...] = jnp.zeros_like(c2_s)

    # Batched pre-gate projections (M = TS*Bp) — off the serial chain.
    # Layer 2 consumes the layer-1 outputs produced during the PREVIOUS grid
    # step, so h1_chunk must be read BEFORE this step's layer 1 overwrites it.
    pg2_s[...] = (jnp.dot(h1_chunk[...], wih2_ref[...],
                          preferred_element_type=jnp.float32) + b2_ref[...])
    pg1_s[...] = (jnp.dot(x_ref[...], wih1_ref[...],
                          preferred_element_type=jnp.float32) + b1_ref[...])

    def cell(pre, h_prev, c_prev, whh_ref):
        # pre: (Bp, 4H) f32 precomputed input contribution (+ bias).
        g = pre + jnp.dot(h_prev.astype(whh_ref.dtype), whh_ref[...],
                          preferred_element_type=jnp.float32)
        i_g = jax.nn.sigmoid(g[:, 0 * h:1 * h])
        f_g = jax.nn.sigmoid(g[:, 1 * h:2 * h])
        g_g = jnp.tanh(g[:, 2 * h:3 * h])
        o_g = jax.nn.sigmoid(g[:, 3 * h:4 * h])
        c_new = f_g * c_prev + i_g * g_g
        h_new = o_g * jnp.tanh(c_new)
        return h_new, c_new

    # Hidden / cell state stays in vector registers for the whole chunk.
    h1, c1 = h1_s[...], c1_s[...]
    h2, c2 = h2_s[...], c2_s[...]

    # Layer-1 chunk `step` and layer-2 chunk `step-1` are independent chains;
    # a single straight-line unrolled region lets the scheduler interleave
    # them (fills serial-recurrence latency bubbles).
    for s in range(ts):                       # static unroll (ts is Python int)
        r0 = s * bp                           # sublane-aligned (bp % 8 == 0)
        h1, c1 = cell(pg1_s[r0:r0 + bp, :], h1, c1, whh1_ref)
        h1_chunk[r0:r0 + bp, :] = h1.astype(h1_chunk.dtype)

        h2, c2 = cell(pg2_s[r0:r0 + bp, :], h2, c2, whh2_ref)
        out_ref[r0:r0 + bp, :] = h2.astype(out_ref.dtype)

    h1_s[...], c1_s[...] = h1, c1
    h2_s[...], c2_s[...] = h2, c2


def lstm2_forward(x_bth, params, matmul_dtype=jnp.bfloat16, max_ts: int = 16):
    """x_bth: (B, T, H) batch-first.  Returns (B, T, H) like nn.LSTM output."""
    (w_ih1, w_hh1, b_ih1, b_hh1), (w_ih2, w_hh2, b_ih2, b_hh2) = params
    B, T, H = x_bth.shape
    cdt = matmul_dtype

    Bp = max(8, _round_up(B, 8))        # sublane-aligned batch
    TS = min(T, max_ts)                 # time steps per grid iteration
    n_chunks = -(-T // TS)
    Tp = n_chunks * TS                  # padded "real" time steps
    T_in = (n_chunks + 1) * TS          # + one dummy chunk for wavefront drain
    steps = n_chunks + 1

    wih1_t = jnp.transpose(w_ih1).astype(cdt)            # (H, 4H)
    whh1_t = jnp.transpose(w_hh1).astype(cdt)
    wih2_t = jnp.transpose(w_ih2).astype(cdt)
    whh2_t = jnp.transpose(w_hh2).astype(cdt)
    b1 = (b_ih1 + b_hh1).astype(jnp.float32).reshape(1, 4 * H)
    b2 = (b_ih2 + b_hh2).astype(jnp.float32).reshape(1, 4 * H)

    # Time-major, zero-padded, flattened input: row index = t * Bp + b.
    x_tb = jnp.transpose(x_bth, (1, 0, 2))               # (T, B, H)
    x_tb = jnp.pad(x_tb, ((0, T_in - T), (0, Bp - B), (0, 0)))
    x_tb = x_tb.reshape(T_in * Bp, H).astype(cdt)

    kernel = functools.partial(_fused_lstm2_kernel, ts=TS, bp=Bp, h=H)

    dsize = jnp.dtype(x_bth.dtype).itemsize
    wsize = jnp.dtype(cdt).itemsize
    cost = pl.CostEstimate(
        flops=32 * steps * TS * Bp * H * H,          # 2 proj + 2 recurrent matmuls
        transcendentals=10 * steps * TS * Bp * H,    # 3 sigmoid + 2 tanh, 2 layers
        bytes_accessed=(wsize * T_in * Bp * H        # x (bf16)
                        + dsize * T_in * Bp * H      # output
                        + wsize * 4 * H * 4 * H      # resident weights
                        + 4 * 2 * 4 * H),            # biases
    )

    out_flat = pl.pallas_call(
        kernel,
        out_shape=jax.ShapeDtypeStruct((T_in * Bp, H), x_bth.dtype),
        grid_spec=pltpu.PrefetchScalarGridSpec(
            num_scalar_prefetch=0,
            grid=(steps,),
            in_specs=[
                pl.BlockSpec((TS * Bp, H), lambda i: (i, 0)),     # x chunk i
                pl.BlockSpec((H, 4 * H), lambda i: (0, 0)),       # W_ih1^T
                pl.BlockSpec((H, 4 * H), lambda i: (0, 0)),       # W_hh1^T
                pl.BlockSpec((H, 4 * H), lambda i: (0, 0)),       # W_ih2^T
                pl.BlockSpec((H, 4 * H), lambda i: (0, 0)),       # W_hh2^T
                pl.BlockSpec((1, 4 * H), lambda i: (0, 0)),       # b1
                pl.BlockSpec((1, 4 * H), lambda i: (0, 0)),       # b2
            ],
            out_specs=pl.BlockSpec((TS * Bp, H), lambda i: (i, 0)),
            scratch_shapes=[
                pltpu.VMEM((Bp, H), jnp.float32),            # h1 state
                pltpu.VMEM((Bp, H), jnp.float32),            # c1 state
                pltpu.VMEM((Bp, H), jnp.float32),            # h2 state
                pltpu.VMEM((Bp, H), jnp.float32),            # c2 state
                pltpu.VMEM((TS * Bp, H), cdt),               # layer-1 chunk out
                pltpu.VMEM((TS * Bp, 4 * H), jnp.float32),   # layer-1 pre-gates
                pltpu.VMEM((TS * Bp, 4 * H), jnp.float32),   # layer-2 pre-gates
            ],
        ),
        compiler_params=pltpu.CompilerParams(
            dimension_semantics=("arbitrary",),    # sequential recurrence
        ),
        cost_estimate=cost,
    )(x_tb, wih1_t, whh1_t, wih2_t, whh2_t, b1, b2)

    # Drop the dummy first output chunk (wavefront fill) and padding.
    out = out_flat[TS * Bp:].reshape(Tp, Bp, H)[:T, :B, :]
    return jnp.transpose(out, (1, 0, 2))


def _lstm_reference(x_bth, params):
    """Pure-JAX float32 reference (PyTorch nn.LSTM semantics) for validation."""
    x = jnp.transpose(x_bth, (1, 0, 2)).astype(jnp.float32)   # (T, B, H)
    for (w_ih, w_hh, b_ih, b_hh) in params:
        H = w_hh.shape[1]
        B = x.shape[1]

        def step(carry, x_t, w_ih=w_ih, w_hh=w_hh, b_ih=b_ih, b_hh=b_hh, H=H):
            h, c = carry
            g = x_t @ w_ih.T + h @ w_hh.T + b_ih + b_hh
            i = jax.nn.sigmoid(g[:, :H])
            f = jax.nn.sigmoid(g[:, H:2 * H])
            gg = jnp.tanh(g[:, 2 * H:3 * H])
            o = jax.nn.sigmoid(g[:, 3 * H:])
            c = f * c + i * gg
            h = o * jnp.tanh(c)
            return (h, c), h

        init = (jnp.zeros((B, H), jnp.float32), jnp.zeros((B, H), jnp.float32))
        _, x = lax.scan(step, init, x)
    return jnp.transpose(x, (1, 0, 2))


class Processor:
    """JAX/Pallas port of the PyTorch Processor (2-layer batch_first LSTM)."""

    def __init__(self, hidden_dim: int = 256, key=None,
                 matmul_dtype=jnp.bfloat16):
        self.hidden_dim = hidden_dim
        self.matmul_dtype = matmul_dtype
        if key is None:
            key = jax.random.PRNGKey(0)
        bound = 1.0 / math.sqrt(hidden_dim)
        params = []
        for _ in range(2):  # num_layers = 2
            key, k1, k2, k3, k4 = jax.random.split(key, 5)
            w_ih = jax.random.uniform(k1, (4 * hidden_dim, hidden_dim),
                                      jnp.float32, -bound, bound)
            w_hh = jax.random.uniform(k2, (4 * hidden_dim, hidden_dim),
                                      jnp.float32, -bound, bound)
            b_ih = jax.random.uniform(k3, (4 * hidden_dim,),
                                      jnp.float32, -bound, bound)
            b_hh = jax.random.uniform(k4, (4 * hidden_dim,),
                                      jnp.float32, -bound, bound)
            params.append((w_ih, w_hh, b_ih, b_hh))
        self.params = tuple(params)

    @functools.partial(jax.jit, static_argnums=0)
    def __call__(self, x_bth):
        # x_bth: (B, T, H) batch_first, like the PyTorch module.
        return lstm2_forward(x_bth, self.params, self.matmul_dtype)


if __name__ == "__main__":
    B, T, H = 2, 8, 32
    key = jax.random.PRNGKey(0)
    k_in, k_param = jax.random.split(key)
    x = jax.random.normal(k_in, (B, T, H), jnp.float32)

    model = Processor(hidden_dim=H, key=k_param)
    out = jax.block_until_ready(model(x))
    assert out.shape == (B, T, H)

    ref = jax.block_until_ready(_lstm_reference(x, model.params))
    max_err = float(jnp.max(jnp.abs(out.astype(jnp.float32) - ref)))
    assert max_err < 1e-1, f"max abs error vs f32 reference: {max_err}"

    print("KERNEL_OK")
</pallas_src>

<mosaic_0001>
module attributes {stable_mosaic.version = 11 : i64} {
  func.func @_fused_lstm2_kernel(%arg0: i32, %arg1: memref<64x32xbf16, #tpu.memory_space<vmem>>, %arg2: memref<32x128xbf16, #tpu.memory_space<vmem>>, %arg3: memref<32x128xbf16, #tpu.memory_space<vmem>>, %arg4: memref<32x128xbf16, #tpu.memory_space<vmem>>, %arg5: memref<32x128xbf16, #tpu.memory_space<vmem>>, %arg6: memref<1x128xf32, #tpu.memory_space<vmem>>, %arg7: memref<1x128xf32, #tpu.memory_space<vmem>>, %arg8: memref<64x32xf32, #tpu.memory_space<vmem>>, %arg9: memref<8x32xf32, #tpu.memory_space<vmem>>, %arg10: memref<8x32xf32, #tpu.memory_space<vmem>>, %arg11: memref<8x32xf32, #tpu.memory_space<vmem>>, %arg12: memref<8x32xf32, #tpu.memory_space<vmem>>, %arg13: memref<64x32xbf16, #tpu.memory_space<vmem>>, %arg14: memref<64x128xf32, #tpu.memory_space<vmem>>, %arg15: memref<64x128xf32, #tpu.memory_space<vmem>>) attributes {dimension_semantics = [#tpu.dimension_semantics<arbitrary>], iteration_bounds = array<i64: 2>, scalar_prefetch = 0 : i64, scratch_operands = 7 : i64, tpu.core_type = #tpu.core_type<tc>, window_params = [{transform_indices = @transform_0, window_bounds = array<i64: 64, 32>}, {pipeline_mode = #tpu.pipeline_mode<synchronous>, transform_indices = @transform_1, window_bounds = array<i64: 32, 128>}, {pipeline_mode = #tpu.pipeline_mode<synchronous>, transform_indices = @transform_2, window_bounds = array<i64: 32, 128>}, {pipeline_mode = #tpu.pipeline_mode<synchronous>, transform_indices = @transform_3, window_bounds = array<i64: 32, 128>}, {pipeline_mode = #tpu.pipeline_mode<synchronous>, transform_indices = @transform_4, window_bounds = array<i64: 32, 128>}, {pipeline_mode = #tpu.pipeline_mode<synchronous>, transform_indices = @transform_5, window_bounds = array<i64: 1, 128>}, {pipeline_mode = #tpu.pipeline_mode<synchronous>, transform_indices = @transform_6, window_bounds = array<i64: 1, 128>}, {transform_indices = @transform_7, window_bounds = array<i64: 64, 32>}]} {
    %c0_i32 = arith.constant 0 : i32
    %0 = arith.cmpi eq, %arg0, %c0_i32 : i32
    %1 = arith.extui %0 : i1 to i32
    %c0_i32_0 = arith.constant 0 : i32
    %2 = arith.cmpi ne, %1, %c0_i32_0 : i32
    scf.if %2 {
      %cst_187 = arith.constant 0.000000e+00 : f32
      %532 = vector.broadcast %cst_187 : f32 to vector<8x32xf32>
      %c0_188 = arith.constant 0 : index
      %c0_189 = arith.constant 0 : index
      %533 = vector.load %arg9[%c0_188, %c0_189] : memref<8x32xf32, #tpu.memory_space<vmem>>, vector<8x32xf32>
      tpu.vector_store %arg9[%c0_188, %c0_189], %532 {strides = array<i32>} : memref<8x32xf32, #tpu.memory_space<vmem>>, vector<8x32xf32>,
      %cst_190 = arith.constant 0.000000e+00 : f32
      %534 = vector.broadcast %cst_190 : f32 to vector<8x32xf32>
      %c0_191 = arith.constant 0 : index
      %c0_192 = arith.constant 0 : index
      %535 = vector.load %arg10[%c0_191, %c0_192] : memref<8x32xf32, #tpu.memory_space<vmem>>, vector<8x32xf32>
      tpu.vector_store %arg10[%c0_191, %c0_192], %534 {strides = array<i32>} : memref<8x32xf32, #tpu.memory_space<vmem>>, vector<8x32xf32>,
    } else {
    }
    %c1_i32 = arith.constant 1 : i32
    %3 = arith.cmpi eq, %arg0, %c1_i32 : i32
    %4 = arith.extui %3 : i1 to i32
    %c0_i32_1 = arith.constant 0 : i32
    %5 = arith.cmpi ne, %4, %c0_i32_1 : i32
    scf.if %5 {
      %cst_187 = arith.constant 0.000000e+00 : f32
      %532 = vector.broadcast %cst_187 : f32 to vector<8x32xf32>
      %c0_188 = arith.constant 0 : index
      %c0_189 = arith.constant 0 : index
      %533 = vector.load %arg11[%c0_188, %c0_189] : memref<8x32xf32, #tpu.memory_space<vmem>>, vector<8x32xf32>
      tpu.vector_store %arg11[%c0_188, %c0_189], %532 {strides = array<i32>} : memref<8x32xf32, #tpu.memory_space<vmem>>, vector<8x32xf32>,
      %cst_190 = arith.constant 0.000000e+00 : f32
      %534 = vector.broadcast %cst_190 : f32 to vector<8x32xf32>
      %c0_191 = arith.constant 0 : index
      %c0_192 = arith.constant 0 : index
      %535 = vector.load %arg12[%c0_191, %c0_192] : memref<8x32xf32, #tpu.memory_space<vmem>>, vector<8x32xf32>
      tpu.vector_store %arg12[%c0_191, %c0_192], %534 {strides = array<i32>} : memref<8x32xf32, #tpu.memory_space<vmem>>, vector<8x32xf32>,
    } else {
    }
    %c0 = arith.constant 0 : index
    %c0_2 = arith.constant 0 : index
    %6 = vector.load %arg13[%c0, %c0_2] : memref<64x32xbf16, #tpu.memory_space<vmem>>, vector<64x32xbf16>
    %c0_3 = arith.constant 0 : index
    %c0_4 = arith.constant 0 : index
    %7 = vector.load %arg4[%c0_3, %c0_4] : memref<32x128xbf16, #tpu.memory_space<vmem>>, vector<32x128xbf16>
    %cst = arith.constant dense<0.000000e+00> : vector<64x128xf32>
    %8 = tpu.matmul %6, %7, %cst {dimension_numbers = #tpu.dot_dimension_numbers<[1], [0], [0], [1], [0, 0, 1, 1], [], []>} : vector<64x32xbf16>, vector<32x128xbf16>, vector<64x128xf32> -> vector<64x128xf32>
    %c0_5 = arith.constant 0 : index
    %c0_6 = arith.constant 0 : index
    %9 = vector.load %arg7[%c0_5, %c0_6] : memref<1x128xf32, #tpu.memory_space<vmem>>, vector<1x128xf32>
    %10 = vector.broadcast %9 : vector<1x128xf32> to vector<64x128xf32>
    %11 = arith.addf %8, %10 : vector<64x128xf32>
    %c0_7 = arith.constant 0 : index
    %c0_8 = arith.constant 0 : index
    %12 = vector.load %arg15[%c0_7, %c0_8] : memref<64x128xf32, #tpu.memory_space<vmem>>, vector<64x128xf32>
    tpu.vector_store %arg15[%c0_7, %c0_8], %11 {strides = array<i32>} : memref<64x128xf32, #tpu.memory_space<vmem>>, vector<64x128xf32>,
    %c0_9 = arith.constant 0 : index
    %c0_10 = arith.constant 0 : index
    %13 = vector.load %arg1[%c0_9, %c0_10] : memref<64x32xbf16, #tpu.memory_space<vmem>>, vector<64x32xbf16>
    %c0_11 = arith.constant 0 : index
    %c0_12 = arith.constant 0 : index
    %14 = vector.load %arg2[%c0_11, %c0_12] : memref<32x128xbf16, #tpu.memory_space<vmem>>, vector<32x128xbf16>
    %cst_13 = arith.constant dense<0.000000e+00> : vector<64x128xf32>
    %15 = tpu.matmul %13, %14, %cst_13 {dimension_numbers = #tpu.dot_dimension_numbers<[1], [0], [0], [1], [0, 0, 1, 1], [], []>} : vector<64x32xbf16>, vector<32x128xbf16>, vector<64x128xf32> -> vector<64x128xf32>
    %c0_14 = arith.constant 0 : index
    %c0_15 = arith.constant 0 : index
    %16 = vector.load %arg6[%c0_14, %c0_15] : memref<1x128xf32, #tpu.memory_space<vmem>>, vector<1x128xf32>
    %17 = vector.broadcast %16 : vector<1x128xf32> to vector<64x128xf32>
    %18 = arith.addf %15, %17 : vector<64x128xf32>
    %c0_16 = arith.constant 0 : index
    %c0_17 = arith.constant 0 : index
    %19 = vector.load %arg14[%c0_16, %c0_17] : memref<64x128xf32, #tpu.memory_space<vmem>>, vector<64x128xf32>
    tpu.vector_store %arg14[%c0_16, %c0_17], %18 {strides = array<i32>} : memref<64x128xf32, #tpu.memory_space<vmem>>, vector<64x128xf32>,
    %c0_18 = arith.constant 0 : index
    %c0_19 = arith.constant 0 : index
    %20 = vector.load %arg9[%c0_18, %c0_19] : memref<8x32xf32, #tpu.memory_space<vmem>>, vector<8x32xf32>
    %c0_20 = arith.constant 0 : index
    %c0_21 = arith.constant 0 : index
    %21 = vector.load %arg10[%c0_20, %c0_21] : memref<8x32xf32, #tpu.memory_space<vmem>>, vector<8x32xf32>
    %c0_22 = arith.constant 0 : index
    %c0_23 = arith.constant 0 : index
    %22 = vector.load %arg11[%c0_22, %c0_23] : memref<8x32xf32, #tpu.memory_space<vmem>>, vector<8x32xf32>
    %c0_24 = arith.constant 0 : index
    %c0_25 = arith.constant 0 : index
    %23 = vector.load %arg12[%c0_24, %c0_25] : memref<8x32xf32, #tpu.memory_space<vmem>>, vector<8x32xf32>
    %c0_26 = arith.constant 0 : index
    %c0_27 = arith.constant 0 : index
    %24 = vector.load %arg14[%c0_26, %c0_27] : memref<64x128xf32, #tpu.memory_space<vmem>>, vector<8x128xf32>
    %25 = arith.truncf %20 : vector<8x32xf32> to vector<8x32xbf16>
    %c0_28 = arith.constant 0 : index
    %c0_29 = arith.constant 0 : index
    %26 = vector.load %arg3[%c0_28, %c0_29] : memref<32x128xbf16, #tpu.memory_space<vmem>>, vector<32x128xbf16>
    %cst_30 = arith.constant dense<0.000000e+00> : vector<8x128xf32>
    %27 = tpu.matmul %25, %26, %cst_30 {dimension_numbers = #tpu.dot_dimension_numbers<[1], [0], [0], [1], [0, 0, 1, 1], [], []>} : vector<8x32xbf16>, vector<32x128xbf16>, vector<8x128xf32> -> vector<8x128xf32>
    %28 = arith.addf %24, %27 : vector<8x128xf32>
    %29 = vector.extract_strided_slice %28 {offsets = [0, 0], sizes = [8, 32], strides = [1, 1]} : vector<8x128xf32> to vector<8x32xf32>
    %30 = arith.negf %29 : vector<8x32xf32>
    %31 = math.exp %30 : vector<8x32xf32>
    %cst_31 = arith.constant 1.000000e+00 : f32
    %32 = vector.broadcast %cst_31 : f32 to vector<8x32xf32>
    %33 = arith.addf %32, %31 : vector<8x32xf32>
    %34 = arith.divf %32, %33 : vector<8x32xf32>
    %35 = vector.extract_strided_slice %28 {offsets = [0, 32], sizes = [8, 32], strides = [1, 1]} : vector<8x128xf32> to vector<8x32xf32>
    %36 = arith.negf %35 : vector<8x32xf32>
    %37 = math.exp %36 : vector<8x32xf32>
    %cst_32 = arith.constant 1.000000e+00 : f32
    %38 = vector.broadcast %cst_32 : f32 to vector<8x32xf32>
    %39 = arith.addf %38, %37 : vector<8x32xf32>
    %40 = arith.divf %38, %39 : vector<8x32xf32>
    %41 = vector.extract_strided_slice %28 {offsets = [0, 64], sizes = [8, 32], strides = [1, 1]} : vector<8x128xf32> to vector<8x32xf32>
    %42 = math.tanh %41 : vector<8x32xf32>
    %43 = vector.extract_strided_slice %28 {offsets = [0, 96], sizes = [8, 32], strides = [1, 1]} : vector<8x128xf32> to vector<8x32xf32>
    %44 = arith.negf %43 : vector<8x32xf32>
    %45 = math.exp %44 : vector<8x32xf32>
    %cst_33 = arith.constant 1.000000e+00 : f32
    %46 = vector.broadcast %cst_33 : f32 to vector<8x32xf32>
    %47 = arith.addf %46, %45 : vector<8x32xf32>
    %48 = arith.divf %46, %47 : vector<8x32xf32>
    %49 = arith.mulf %40, %21 : vector<8x32xf32>
    %50 = arith.mulf %34, %42 : vector<8x32xf32>
    %51 = arith.addf %49, %50 : vector<8x32xf32>
    %52 = math.tanh %51 : vector<8x32xf32>
    %53 = arith.mulf %48, %52 : vector<8x32xf32>
    %54 = arith.truncf %53 : vector<8x32xf32> to vector<8x32xbf16>
    %c0_34 = arith.constant 0 : index
    %c0_35 = arith.constant 0 : index
    %55 = vector.load %arg13[%c0_34, %c0_35] : memref<64x32xbf16, #tpu.memory_space<vmem>>, vector<8x32xbf16>
    tpu.vector_store %arg13[%c0_34, %c0_35], %54 {strides = array<i32>} : memref<64x32xbf16, #tpu.memory_space<vmem>>, vector<8x32xbf16>,
    %c0_36 = arith.constant 0 : index
    %c0_37 = arith.constant 0 : index
    %56 = vector.load %arg15[%c0_36, %c0_37] : memref<64x128xf32, #tpu.memory_space<vmem>>, vector<8x128xf32>
    %57 = arith.truncf %22 : vector<8x32xf32> to vector<8x32xbf16>
    %c0_38 = arith.constant 0 : index
    %c0_39 = arith.constant 0 : index
    %58 = vector.load %arg5[%c0_38, %c0_39] : memref<32x128xbf16, #tpu.memory_space<vmem>>, vector<32x128xbf16>
    %cst_40 = arith.constant dense<0.000000e+00> : vector<8x128xf32>
    %59 = tpu.matmul %57, %58, %cst_40 {dimension_numbers = #tpu.dot_dimension_numbers<[1], [0], [0], [1], [0, 0, 1, 1], [], []>} : vector<8x32xbf16>, vector<32x128xbf16>, vector<8x128xf32> -> vector<8x128xf32>
    %60 = arith.addf %56, %59 : vector<8x128xf32>
    %61 = vector.extract_strided_slice %60 {offsets = [0, 0], sizes = [8, 32], strides = [1, 1]} : vector<8x128xf32> to vector<8x32xf32>
    %62 = arith.negf %61 : vector<8x32xf32>
    %63 = math.exp %62 : vector<8x32xf32>
    %cst_41 = arith.constant 1.000000e+00 : f32
    %64 = vector.broadcast %cst_41 : f32 to vector<8x32xf32>
    %65 = arith.addf %64, %63 : vector<8x32xf32>
    %66 = arith.divf %64, %65 : vector<8x32xf32>
    %67 = vector.extract_strided_slice %60 {offsets = [0, 32], sizes = [8, 32], strides = [1, 1]} : vector<8x128xf32> to vector<8x32xf32>
    %68 = arith.negf %67 : vector<8x32xf32>
    %69 = math.exp %68 : vector<8x32xf32>
    %cst_42 = arith.constant 1.000000e+00 : f32
    %70 = vector.broadcast %cst_42 : f32 to vector<8x32xf32>
    %71 = arith.addf %70, %69 : vector<8x32xf32>
    %72 = arith.divf %70, %71 : vector<8x32xf32>
    %73 = vector.extract_strided_slice %60 {offsets = [0, 64], sizes = [8, 32], strides = [1, 1]} : vector<8x128xf32> to vector<8x32xf32>
    %74 = math.tanh %73 : vector<8x32xf32>
    %75 = vector.extract_strided_slice %60 {offsets = [0, 96], sizes = [8, 32], strides = [1, 1]} : vector<8x128xf32> to vector<8x32xf32>
    %76 = arith.negf %75 : vector<8x32xf32>
    %77 = math.exp %76 : vector<8x32xf32>
    %cst_43 = arith.constant 1.000000e+00 : f32
    %78 = vector.broadcast %cst_43 : f32 to vector<8x32xf32>
    %79 = arith.addf %78, %77 : vector<8x32xf32>
    %80 = arith.divf %78, %79 : vector<8x32xf32>
    %81 = arith.mulf %72, %23 : vector<8x32xf32>
    %82 = arith.mulf %66, %74 : vector<8x32xf32>
    %83 = arith.addf %81, %82 : vector<8x32xf32>
    %84 = math.tanh %83 : vector<8x32xf32>
    %85 = arith.mulf %80, %84 : vector<8x32xf32>
    %c0_44 = arith.constant 0 : index
    %c0_45 = arith.constant 0 : index
    %86 = vector.load %arg8[%c0_44, %c0_45] : memref<64x32xf32, #tpu.memory_space<vmem>>, vector<8x32xf32>
    tpu.vector_store %arg8[%c0_44, %c0_45], %85 {strides = array<i32>} : memref<64x32xf32, #tpu.memory_space<vmem>>, vector<8x32xf32>,
    %c8 = arith.constant 8 : index
    %c0_46 = arith.constant 0 : index
    %87 = vector.load %arg14[%c8, %c0_46] : memref<64x128xf32, #tpu.memory_space<vmem>>, vector<8x128xf32>
    %88 = arith.truncf %53 : vector<8x32xf32> to vector<8x32xbf16>
    %c0_47 = arith.constant 0 : index
    %c0_48 = arith.constant 0 : index
    %89 = vector.load %arg3[%c0_47, %c0_48] : memref<32x128xbf16, #tpu.memory_space<vmem>>, vector<32x128xbf16>
    %cst_49 = arith.constant dense<0.000000e+00> : vector<8x128xf32>
    %90 = tpu.matmul %88, %89, %cst_49 {dimension_numbers = #tpu.dot_dimension_numbers<[1], [0], [0], [1], [0, 0, 1, 1], [], []>} : vector<8x32xbf16>, vector<32x128xbf16>, vector<8x128xf32> -> vector<8x128xf32>
    %91 = arith.addf %87, %90 : vector<8x128xf32>
    %92 = vector.extract_strided_slice %91 {offsets = [0, 0], sizes = [8, 32], strides = [1, 1]} : vector<8x128xf32> to vector<8x32xf32>
    %93 = arith.negf %92 : vector<8x32xf32>
    %94 = math.exp %93 : vector<8x32xf32>
    %cst_50 = arith.constant 1.000000e+00 : f32
    %95 = vector.broadcast %cst_50 : f32 to vector<8x32xf32>
    %96 = arith.addf %95, %94 : vector<8x32xf32>
    %97 = arith.divf %95, %96 : vector<8x32xf32>
    %98 = vector.extract_strided_slice %91 {offsets = [0, 32], sizes = [8, 32], strides = [1, 1]} : vector<8x128xf32> to vector<8x32xf32>
    %99 = arith.negf %98 : vector<8x32xf32>
    %100 = math.exp %99 : vector<8x32xf32>
    %cst_51 = arith.constant 1.000000e+00 : f32
    %101 = vector.broadcast %cst_51 : f32 to vector<8x32xf32>
    %102 = arith.addf %101, %100 : vector<8x32xf32>
    %103 = arith.divf %101, %102 : vector<8x32xf32>
    %104 = vector.extract_strided_slice %91 {offsets = [0, 64], sizes = [8, 32], strides = [1, 1]} : vector<8x128xf32> to vector<8x32xf32>
    %105 = math.tanh %104 : vector<8x32xf32>
    %106 = vector.extract_strided_slice %91 {offsets = [0, 96], sizes = [8, 32], strides = [1, 1]} : vector<8x128xf32> to vector<8x32xf32>
    %107 = arith.negf %106 : vector<8x32xf32>
    %108 = math.exp %107 : vector<8x32xf32>
    %cst_52 = arith.constant 1.000000e+00 : f32
    %109 = vector.broadcast %cst_52 : f32 to vector<8x32xf32>
    %110 = arith.addf %109, %108 : vector<8x32xf32>
    %111 = arith.divf %109, %110 : vector<8x32xf32>
    %112 = arith.mulf %103, %51 : vector<8x32xf32>
    %113 = arith.mulf %97, %105 : vector<8x32xf32>
    %114 = arith.addf %112, %113 : vector<8x32xf32>
    %115 = math.tanh %114 : vector<8x32xf32>
    %116 = arith.mulf %111, %115 : vector<8x32xf32>
    %117 = arith.truncf %116 : vector<8x32xf32> to vector<8x32xbf16>
    %c8_53 = arith.constant 8 : index
    %c0_54 = arith.constant 0 : index
    %118 = vector.load %arg13[%c8_53, %c0_54] : memref<64x32xbf16, #tpu.memory_space<vmem>>, vector<8x32xbf16>
    tpu.vector_store %arg13[%c8_53, %c0_54], %117 {strides = array<i32>} : memref<64x32xbf16, #tpu.memory_space<vmem>>, vector<8x32xbf16>,
    %c8_55 = arith.constant 8 : index
    %c0_56 = arith.constant 0 : index
    %119 = vector.load %arg15[%c8_55, %c0_56] : memref<64x128xf32, #tpu.memory_space<vmem>>, vector<8x128xf32>
    %120 = arith.truncf %85 : vector<8x32xf32> to vector<8x32xbf16>
    %c0_57 = arith.constant 0 : index
    %c0_58 = arith.constant 0 : index
    %121 = vector.load %arg5[%c0_57, %c0_58] : memref<32x128xbf16, #tpu.memory_space<vmem>>, vector<32x128xbf16>
    %cst_59 = arith.constant dense<0.000000e+00> : vector<8x128xf32>
    %122 = tpu.matmul %120, %121, %cst_59 {dimension_numbers = #tpu.dot_dimension_numbers<[1], [0], [0], [1], [0, 0, 1, 1], [], []>} : vector<8x32xbf16>, vector<32x128xbf16>, vector<8x128xf32> -> vector<8x128xf32>
    %123 = arith.addf %119, %122 : vector<8x128xf32>
    %124 = vector.extract_strided_slice %123 {offsets = [0, 0], sizes = [8, 32], strides = [1, 1]} : vector<8x128xf32> to vector<8x32xf32>
    %125 = arith.negf %124 : vector<8x32xf32>
    %126 = math.exp %125 : vector<8x32xf32>
    %cst_60 = arith.constant 1.000000e+00 : f32
    %127 = vector.broadcast %cst_60 : f32 to vector<8x32xf32>
    %128 = arith.addf %127, %126 : vector<8x32xf32>
    %129 = arith.divf %127, %128 : vector<8x32xf32>
    %130 = vector.extract_strided_slice %123 {offsets = [0, 32], sizes = [8, 32], strides = [1, 1]} : vector<8x128xf32> to vector<8x32xf32>
    %131 = arith.negf %130 : vector<8x32xf32>
    %132 = math.exp %131 : vector<8x32xf32>
    %cst_61 = arith.constant 1.000000e+00 : f32
    %133 = vector.broadcast %cst_61 : f32 to vector<8x32xf32>
    %134 = arith.addf %133, %132 : vector<8x32xf32>
    %135 = arith.divf %133, %134 : vector<8x32xf32>
    %136 = vector.extract_strided_slice %123 {offsets = [0, 64], sizes = [8, 32], strides = [1, 1]} : vector<8x128xf32> to vector<8x32xf32>
    %137 = math.tanh %136 : vector<8x32xf32>
    %138 = vector.extract_strided_slice %123 {offsets = [0, 96], sizes = [8, 32], strides = [1, 1]} : vector<8x128xf32> to vector<8x32xf32>
    %139 = arith.negf %138 : vector<8x32xf32>
    %140 = math.exp %139 : vector<8x32xf32>
    %cst_62 = arith.constant 1.000000e+00 : f32
    %141 = vector.broadcast %cst_62 : f32 to vector<8x32xf32>
    %142 = arith.addf %141, %140 : vector<8x32xf32>
    %143 = arith.divf %141, %142 : vector<8x32xf32>
    %144 = arith.mulf %135, %83 : vector<8x32xf32>
    %145 = arith.mulf %129, %137 : vector<8x32xf32>
    %146 = arith.addf %144, %145 : vector<8x32xf32>
    %147 = math.tanh %146 : vector<8x32xf32>
    %148 = arith.mulf %143, %147 : vector<8x32xf32>
    %c8_63 = arith.constant 8 : index
    %c0_64 = arith.constant 0 : index
    %149 = vector.load %arg8[%c8_63, %c0_64] : memref<64x32xf32, #tpu.memory_space<vmem>>, vector<8x32xf32>
    tpu.vector_store %arg8[%c8_63, %c0_64], %148 {strides = array<i32>} : memref<64x32xf32, #tpu.memory_space<vmem>>, vector<8x32xf32>,
    %c16 = arith.constant 16 : index
    %c0_65 = arith.constant 0 : index
    %150 = vector.load %arg14[%c16, %c0_65] : memref<64x128xf32, #tpu.memory_space<vmem>>, vector<8x128xf32>
    %151 = arith.truncf %116 : vector<8x32xf32> to vector<8x32xbf16>
    %c0_66 = arith.constant 0 : index
    %c0_67 = arith.constant 0 : index
    %152 = vector.load %arg3[%c0_66, %c0_67] : memref<32x128xbf16, #tpu.memory_space<vmem>>, vector<32x128xbf16>
    %cst_68 = arith.constant dense<0.000000e+00> : vector<8x128xf32>
    %153 = tpu.matmul %151, %152, %cst_68 {dimension_numbers = #tpu.dot_dimension_numbers<[1], [0], [0], [1], [0, 0, 1, 1], [], []>} : vector<8x32xbf16>, vector<32x128xbf16>, vector<8x128xf32> -> vector<8x128xf32>
    %154 = arith.addf %150, %153 : vector<8x128xf32>
    %155 = vector.extract_strided_slice %154 {offsets = [0, 0], sizes = [8, 32], strides = [1, 1]} : vector<8x128xf32> to vector<8x32xf32>
    %156 = arith.negf %155 : vector<8x32xf32>
    %157 = math.exp %156 : vector<8x32xf32>
    %cst_69 = arith.constant 1.000000e+00 : f32
    %158 = vector.broadcast %cst_69 : f32 to vector<8x32xf32>
    %159 = arith.addf %158, %157 : vector<8x32xf32>
    %160 = arith.divf %158, %159 : vector<8x32xf32>
    %161 = vector.extract_strided_slice %154 {offsets = [0, 32], sizes = [8, 32], strides = [1, 1]} : vector<8x128xf32> to vector<8x32xf32>
    %162 = arith.negf %161 : vector<8x32xf32>
    %163 = math.exp %162 : vector<8x32xf32>
    %cst_70 = arith.constant 1.000000e+00 : f32
    %164 = vector.broadcast %cst_70 : f32 to vector<8x32xf32>
    %165 = arith.addf %164, %163 : vector<8x32xf32>
    %166 = arith.divf %164, %165 : vector<8x32xf32>
    %167 = vector.extract_strided_slice %154 {offsets = [0, 64], sizes = [8, 32], strides = [1, 1]} : vector<8x128xf32> to vector<8x32xf32>
    %168 = math.tanh %167 : vector<8x32xf32>
    %169 = vector.extract_strided_slice %154 {offsets = [0, 96], sizes = [8, 32], strides = [1, 1]} : vector<8x128xf32> to vector<8x32xf32>
    %170 = arith.negf %169 : vector<8x32xf32>
    %171 = math.exp %170 : vector<8x32xf32>
    %cst_71 = arith.constant 1.000000e+00 : f32
    %172 = vector.broadcast %cst_71 : f32 to vector<8x32xf32>
    %173 = arith.addf %172, %171 : vector<8x32xf32>
    %174 = arith.divf %172, %173 : vector<8x32xf32>
    %175 = arith.mulf %166, %114 : vector<8x32xf32>
    %176 = arith.mulf %160, %168 : vector<8x32xf32>
    %177 = arith.addf %175, %176 : vector<8x32xf32>
    %178 = math.tanh %177 : vector<8x32xf32>
    %179 = arith.mulf %174, %178 : vector<8x32xf32>
    %180 = arith.truncf %179 : vector<8x32xf32> to vector<8x32xbf16>
    %c16_72 = arith.constant 16 : index
    %c0_73 = arith.constant 0 : index
    %181 = vector.load %arg13[%c16_72, %c0_73] : memref<64x32xbf16, #tpu.memory_space<vmem>>, vector<8x32xbf16>
    tpu.vector_store %arg13[%c16_72, %c0_73], %180 {strides = array<i32>} : memref<64x32xbf16, #tpu.memory_space<vmem>>, vector<8x32xbf16>,
    %c16_74 = arith.constant 16 : index
    %c0_75 = arith.constant 0 : index
    %182 = vector.load %arg15[%c16_74, %c0_75] : memref<64x128xf32, #tpu.memory_space<vmem>>, vector<8x128xf32>
    %183 = arith.truncf %148 : vector<8x32xf32> to vector<8x32xbf16>
    %c0_76 = arith.constant 0 : index
    %c0_77 = arith.constant 0 : index
    %184 = vector.load %arg5[%c0_76, %c0_77] : memref<32x128xbf16, #tpu.memory_space<vmem>>, vector<32x128xbf16>
    %cst_78 = arith.constant dense<0.000000e+00> : vector<8x128xf32>
    %185 = tpu.matmul %183, %184, %cst_78 {dimension_numbers = #tpu.dot_dimension_numbers<[1], [0], [0], [1], [0, 0, 1, 1], [], []>} : vector<8x32xbf16>, vector<32x128xbf16>, vector<8x128xf32> -> vector<8x128xf32>
    %186 = arith.addf %182, %185 : vector<8x128xf32>
    %187 = vector.extract_strided_slice %186 {offsets = [0, 0], sizes = [8, 32], strides = [1, 1]} : vector<8x128xf32> to vector<8x32xf32>
    %188 = arith.negf %187 : vector<8x32xf32>
    %189 = math.exp %188 : vector<8x32xf32>
    %cst_79 = arith.constant 1.000000e+00 : f32
    %190 = vector.broadcast %cst_79 : f32 to vector<8x32xf32>
    %191 = arith.addf %190, %189 : vector<8x32xf32>
    %192 = arith.divf %190, %191 : vector<8x32xf32>
    %193 = vector.extract_strided_slice %186 {offsets = [0, 32], sizes = [8, 32], strides = [1, 1]} : vector<8x128xf32> to vector<8x32xf32>
    %194 = arith.negf %193 : vector<8x32xf32>
    %195 = math.exp %194 : vector<8x32xf32>
    %cst_80 = arith.constant 1.000000e+00 : f32
    %196 = vector.broadcast %cst_80 : f32 to vector<8x32xf32>
    %197 = arith.addf %196, %195 : vector<8x32xf32>
    %198 = arith.divf %196, %197 : vector<8x32xf32>
    %199 = vector.extract_strided_slice %186 {offsets = [0, 64], sizes = [8, 32], strides = [1, 1]} : vector<8x128xf32> to vector<8x32xf32>
    %200 = math.tanh %199 : vector<8x32xf32>
    %201 = vector.extract_strided_slice %186 {offsets = [0, 96], sizes = [8, 32], strides = [1, 1]} : vector<8x128xf32> to vector<8x32xf32>
    %202 = arith.negf %201 : vector<8x32xf32>
    %203 = math.exp %202 : vector<8x32xf32>
    %cst_81 = arith.constant 1.000000e+00 : f32
    %204 = vector.broadcast %cst_81 : f32 to vector<8x32xf32>
    %205 = arith.addf %204, %203 : vector<8x32xf32>
    %206 = arith.divf %204, %205 : vector<8x32xf32>
    %207 = arith.mulf %198, %146 : vector<8x32xf32>
    %208 = arith.mulf %192, %200 : vector<8x32xf32>
    %209 = arith.addf %207, %208 : vector<8x32xf32>
    %210 = math.tanh %209 : vector<8x32xf32>
    %211 = arith.mulf %206, %210 : vector<8x32xf32>
    %c16_82 = arith.constant 16 : index
    %c0_83 = arith.constant 0 : index
    %212 = vector.load %arg8[%c16_82, %c0_83] : memref<64x32xf32, #tpu.memory_space<vmem>>, vector<8x32xf32>
    tpu.vector_store %arg8[%c16_82, %c0_83], %211 {strides = array<i32>} : memref<64x32xf32, #tpu.memory_space<vmem>>, vector<8x32xf32>,
    %c24 = arith.constant 24 : index
    %c0_84 = arith.constant 0 : index
    %213 = vector.load %arg14[%c24, %c0_84] : memref<64x128xf32, #tpu.memory_space<vmem>>, vector<8x128xf32>
    %214 = arith.truncf %179 : vector<8x32xf32> to vector<8x32xbf16>
    %c0_85 = arith.constant 0 : index
    %c0_86 = arith.constant 0 : index
    %215 = vector.load %arg3[%c0_85, %c0_86] : memref<32x128xbf16, #tpu.memory_space<vmem>>, vector<32x128xbf16>
    %cst_87 = arith.constant dense<0.000000e+00> : vector<8x128xf32>
    %216 = tpu.matmul %214, %215, %cst_87 {dimension_numbers = #tpu.dot_dimension_numbers<[1], [0], [0], [1], [0, 0, 1, 1], [], []>} : vector<8x32xbf16>, vector<32x128xbf16>, vector<8x128xf32> -> vector<8x128xf32>
    %217 = arith.addf %213, %216 : vector<8x128xf32>
    %218 = vector.extract_strided_slice %217 {offsets = [0, 0], sizes = [8, 32], strides = [1, 1]} : vector<8x128xf32> to vector<8x32xf32>
    %219 = arith.negf %218 : vector<8x32xf32>
    %220 = math.exp %219 : vector<8x32xf32>
    %cst_88 = arith.constant 1.000000e+00 : f32
    %221 = vector.broadcast %cst_88 : f32 to vector<8x32xf32>
    %222 = arith.addf %221, %220 : vector<8x32xf32>
    %223 = arith.divf %221, %222 : vector<8x32xf32>
    %224 = vector.extract_strided_slice %217 {offsets = [0, 32], sizes = [8, 32], strides = [1, 1]} : vector<8x128xf32> to vector<8x32xf32>
    %225 = arith.negf %224 : vector<8x32xf32>
    %226 = math.exp %225 : vector<8x32xf32>
    %cst_89 = arith.constant 1.000000e+00 : f32
    %227 = vector.broadcast %cst_89 : f32 to vector<8x32xf32>
    %228 = arith.addf %227, %226 : vector<8x32xf32>
    %229 = arith.divf %227, %228 : vector<8x32xf32>
    %230 = vector.extract_strided_slice %217 {offsets = [0, 64], sizes = [8, 32], strides = [1, 1]} : vector<8x128xf32> to vector<8x32xf32>
    %231 = math.tanh %230 : vector<8x32xf32>
    %232 = vector.extract_strided_slice %217 {offsets = [0, 96], sizes = [8, 32], strides = [1, 1]} : vector<8x128xf32> to vector<8x32xf32>
    %233 = arith.negf %232 : vector<8x32xf32>
    %234 = math.exp %233 : vector<8x32xf32>
    %cst_90 = arith.constant 1.000000e+00 : f32
    %235 = vector.broadcast %cst_90 : f32 to vector<8x32xf32>
    %236 = arith.addf %235, %234 : vector<8x32xf32>
    %237 = arith.divf %235, %236 : vector<8x32xf32>
    %238 = arith.mulf %229, %177 : vector<8x32xf32>
    %239 = arith.mulf %223, %231 : vector<8x32xf32>
    %240 = arith.addf %238, %239 : vector<8x32xf32>
    %241 = math.tanh %240 : vector<8x32xf32>
    %242 = arith.mulf %237, %241 : vector<8x32xf32>
    %243 = arith.truncf %242 : vector<8x32xf32> to vector<8x32xbf16>
    %c24_91 = arith.constant 24 : index
    %c0_92 = arith.constant 0 : index
    %244 = vector.load %arg13[%c24_91, %c0_92] : memref<64x32xbf16, #tpu.memory_space<vmem>>, vector<8x32xbf16>
    tpu.vector_store %arg13[%c24_91, %c0_92], %243 {strides = array<i32>} : memref<64x32xbf16, #tpu.memory_space<vmem>>, vector<8x32xbf16>,
    %c24_93 = arith.constant 24 : index
    %c0_94 = arith.constant 0 : index
    %245 = vector.load %arg15[%c24_93, %c0_94] : memref<64x128xf32, #tpu.memory_space<vmem>>, vector<8x128xf32>
    %246 = arith.truncf %211 : vector<8x32xf32> to vector<8x32xbf16>
    %c0_95 = arith.constant 0 : index
    %c0_96 = arith.constant 0 : index
    %247 = vector.load %arg5[%c0_95, %c0_96] : memref<32x128xbf16, #tpu.memory_space<vmem>>, vector<32x128xbf16>
    %cst_97 = arith.constant dense<0.000000e+00> : vector<8x128xf32>
    %248 = tpu.matmul %246, %247, %cst_97 {dimension_numbers = #tpu.dot_dimension_numbers<[1], [0], [0], [1], [0, 0, 1, 1], [], []>} : vector<8x32xbf16>, vector<32x128xbf16>, vector<8x128xf32> -> vector<8x128xf32>
    %249 = arith.addf %245, %248 : vector<8x128xf32>
    %250 = vector.extract_strided_slice %249 {offsets = [0, 0], sizes = [8, 32], strides = [1, 1]} : vector<8x128xf32> to vector<8x32xf32>
    %251 = arith.negf %250 : vector<8x32xf32>
    %252 = math.exp %251 : vector<8x32xf32>
    %cst_98 = arith.constant 1.000000e+00 : f32
    %253 = vector.broadcast %cst_98 : f32 to vector<8x32xf32>
    %254 = arith.addf %253, %252 : vector<8x32xf32>
    %255 = arith.divf %253, %254 : vector<8x32xf32>
    %256 = vector.extract_strided_slice %249 {offsets = [0, 32], sizes = [8, 32], strides = [1, 1]} : vector<8x128xf32> to vector<8x32xf32>
    %257 = arith.negf %256 : vector<8x32xf32>
    %258 = math.exp %257 : vector<8x32xf32>
    %cst_99 = arith.constant 1.000000e+00 : f32
    %259 = vector.broadcast %cst_99 : f32 to vector<8x32xf32>
    %260 = arith.addf %259, %258 : vector<8x32xf32>
    %261 = arith.divf %259, %260 : vector<8x32xf32>
    %262 = vector.extract_strided_slice %249 {offsets = [0, 64], sizes = [8, 32], strides = [1, 1]} : vector<8x128xf32> to vector<8x32xf32>
    %263 = math.tanh %262 : vector<8x32xf32>
    %264 = vector.extract_strided_slice %249 {offsets = [0, 96], sizes = [8, 32], strides = [1, 1]} : vector<8x128xf32> to vector<8x32xf32>
    %265 = arith.negf %264 : vector<8x32xf32>
    %266 = math.exp %265 : vector<8x32xf32>
    %cst_100 = arith.constant 1.000000e+00 : f32
    %267 = vector.broadcast %cst_100 : f32 to vector<8x32xf32>
    %268 = arith.addf %267, %266 : vector<8x32xf32>
    %269 = arith.divf %267, %268 : vector<8x32xf32>
    %270 = arith.mulf %261, %209 : vector<8x32xf32>
    %271 = arith.mulf %255, %263 : vector<8x32xf32>
    %272 = arith.addf %270, %271 : vector<8x32xf32>
    %273 = math.tanh %272 : vector<8x32xf32>
    %274 = arith.mulf %269, %273 : vector<8x32xf32>
    %c24_101 = arith.constant 24 : index
    %c0_102 = arith.constant 0 : index
    %275 = vector.load %arg8[%c24_101, %c0_102] : memref<64x32xf32, #tpu.memory_space<vmem>>, vector<8x32xf32>
    tpu.vector_store %arg8[%c24_101, %c0_102], %274 {strides = array<i32>} : memref<64x32xf32, #tpu.memory_space<vmem>>, vector<8x32xf32>,
    %c32 = arith.constant 32 : index
    %c0_103 = arith.constant 0 : index
    %276 = vector.load %arg14[%c32, %c0_103] : memref<64x128xf32, #tpu.memory_space<vmem>>, vector<8x128xf32>
    %277 = arith.truncf %242 : vector<8x32xf32> to vector<8x32xbf16>
    %c0_104 = arith.constant 0 : index
    %c0_105 = arith.constant 0 : index
    %278 = vector.load %arg3[%c0_104, %c0_105] : memref<32x128xbf16, #tpu.memory_space<vmem>>, vector<32x128xbf16>
    %cst_106 = arith.constant dense<0.000000e+00> : vector<8x128xf32>
    %279 = tpu.matmul %277, %278, %cst_106 {dimension_numbers = #tpu.dot_dimension_numbers<[1], [0], [0], [1], [0, 0, 1, 1], [], []>} : vector<8x32xbf16>, vector<32x128xbf16>, vector<8x128xf32> -> vector<8x128xf32>
    %280 = arith.addf %276, %279 : vector<8x128xf32>
    %281 = vector.extract_strided_slice %280 {offsets = [0, 0], sizes = [8, 32], strides = [1, 1]} : vector<8x128xf32> to vector<8x32xf32>
    %282 = arith.negf %281 : vector<8x32xf32>
    %283 = math.exp %282 : vector<8x32xf32>
    %cst_107 = arith.constant 1.000000e+00 : f32
    %284 = vector.broadcast %cst_107 : f32 to vector<8x32xf32>
    %285 = arith.addf %284, %283 : vector<8x32xf32>
    %286 = arith.divf %284, %285 : vector<8x32xf32>
    %287 = vector.extract_strided_slice %280 {offsets = [0, 32], sizes = [8, 32], strides = [1, 1]} : vector<8x128xf32> to vector<8x32xf32>
    %288 = arith.negf %287 : vector<8x32xf32>
    %289 = math.exp %288 : vector<8x32xf32>
    %cst_108 = arith.constant 1.000000e+00 : f32
    %290 = vector.broadcast %cst_108 : f32 to vector<8x32xf32>
    %291 = arith.addf %290, %289 : vector<8x32xf32>
    %292 = arith.divf %290, %291 : vector<8x32xf32>
    %293 = vector.extract_strided_slice %280 {offsets = [0, 64], sizes = [8, 32], strides = [1, 1]} : vector<8x128xf32> to vector<8x32xf32>
    %294 = math.tanh %293 : vector<8x32xf32>
    %295 = vector.extract_strided_slice %280 {offsets = [0, 96], sizes = [8, 32], strides = [1, 1]} : vector<8x128xf32> to vector<8x32xf32>
    %296 = arith.negf %295 : vector<8x32xf32>
    %297 = math.exp %296 : vector<8x32xf32>
    %cst_109 = arith.constant 1.000000e+00 : f32
    %298 = vector.broadcast %cst_109 : f32 to vector<8x32xf32>
    %299 = arith.addf %298, %297 : vector<8x32xf32>
    %300 = arith.divf %298, %299 : vector<8x32xf32>
    %301 = arith.mulf %292, %240 : vector<8x32xf32>
    %302 = arith.mulf %286, %294 : vector<8x32xf32>
    %303 = arith.addf %301, %302 : vector<8x32xf32>
    %304 = math.tanh %303 : vector<8x32xf32>
    %305 = arith.mulf %300, %304 : vector<8x32xf32>
    %306 = arith.truncf %305 : vector<8x32xf32> to vector<8x32xbf16>
    %c32_110 = arith.constant 32 : index
    %c0_111 = arith.constant 0 : index
    %307 = vector.load %arg13[%c32_110, %c0_111] : memref<64x32xbf16, #tpu.memory_space<vmem>>, vector<8x32xbf16>
    tpu.vector_store %arg13[%c32_110, %c0_111], %306 {strides = array<i32>} : memref<64x32xbf16, #tpu.memory_space<vmem>>, vector<8x32xbf16>,
    %c32_112 = arith.constant 32 : index
    %c0_113 = arith.constant 0 : index
    %308 = vector.load %arg15[%c32_112, %c0_113] : memref<64x128xf32, #tpu.memory_space<vmem>>, vector<8x128xf32>
    %309 = arith.truncf %274 : vector<8x32xf32> to vector<8x32xbf16>
    %c0_114 = arith.constant 0 : index
    %c0_115 = arith.constant 0 : index
    %310 = vector.load %arg5[%c0_114, %c0_115] : memref<32x128xbf16, #tpu.memory_space<vmem>>, vector<32x128xbf16>
    %cst_116 = arith.constant dense<0.000000e+00> : vector<8x128xf32>
    %311 = tpu.matmul %309, %310, %cst_116 {dimension_numbers = #tpu.dot_dimension_numbers<[1], [0], [0], [1], [0, 0, 1, 1], [], []>} : vector<8x32xbf16>, vector<32x128xbf16>, vector<8x128xf32> -> vector<8x128xf32>
    %312 = arith.addf %308, %311 : vector<8x128xf32>
    %313 = vector.extract_strided_slice %312 {offsets = [0, 0], sizes = [8, 32], strides = [1, 1]} : vector<8x128xf32> to vector<8x32xf32>
    %314 = arith.negf %313 : vector<8x32xf32>
    %315 = math.exp %314 : vector<8x32xf32>
    %cst_117 = arith.constant 1.000000e+00 : f32
    %316 = vector.broadcast %cst_117 : f32 to vector<8x32xf32>
    %317 = arith.addf %316, %315 : vector<8x32xf32>
    %318 = arith.divf %316, %317 : vector<8x32xf32>
    %319 = vector.extract_strided_slice %312 {offsets = [0, 32], sizes = [8, 32], strides = [1, 1]} : vector<8x128xf32> to vector<8x32xf32>
    %320 = arith.negf %319 : vector<8x32xf32>
    %321 = math.exp %320 : vector<8x32xf32>
    %cst_118 = arith.constant 1.000000e+00 : f32
    %322 = vector.broadcast %cst_118 : f32 to vector<8x32xf32>
    %323 = arith.addf %322, %321 : vector<8x32xf32>
    %324 = arith.divf %322, %323 : vector<8x32xf32>
    %325 = vector.extract_strided_slice %312 {offsets = [0, 64], sizes = [8, 32], strides = [1, 1]} : vector<8x128xf32> to vector<8x32xf32>
    %326 = math.tanh %325 : vector<8x32xf32>
    %327 = vector.extract_strided_slice %312 {offsets = [0, 96], sizes = [8, 32], strides = [1, 1]} : vector<8x128xf32> to vector<8x32xf32>
    %328 = arith.negf %327 : vector<8x32xf32>
    %329 = math.exp %328 : vector<8x32xf32>
    %cst_119 = arith.constant 1.000000e+00 : f32
    %330 = vector.broadcast %cst_119 : f32 to vector<8x32xf32>
    %331 = arith.addf %330, %329 : vector<8x32xf32>
    %332 = arith.divf %330, %331 : vector<8x32xf32>
    %333 = arith.mulf %324, %272 : vector<8x32xf32>
    %334 = arith.mulf %318, %326 : vector<8x32xf32>
    %335 = arith.addf %333, %334 : vector<8x32xf32>
    %336 = math.tanh %335 : vector<8x32xf32>
    %337 = arith.mulf %332, %336 : vector<8x32xf32>
    %c32_120 = arith.constant 32 : index
    %c0_121 = arith.constant 0 : index
    %338 = vector.load %arg8[%c32_120, %c0_121] : memref<64x32xf32, #tpu.memory_space<vmem>>, vector<8x32xf32>
    tpu.vector_store %arg8[%c32_120, %c0_121], %337 {strides = array<i32>} : memref<64x32xf32, #tpu.memory_space<vmem>>, vector<8x32xf32>,
    %c40 = arith.constant 40 : index
    %c0_122 = arith.constant 0 : index
    %339 = vector.load %arg14[%c40, %c0_122] : memref<64x128xf32, #tpu.memory_space<vmem>>, vector<8x128xf32>
    %340 = arith.truncf %305 : vector<8x32xf32> to vector<8x32xbf16>
    %c0_123 = arith.constant 0 : index
    %c0_124 = arith.constant 0 : index
    %341 = vector.load %arg3[%c0_123, %c0_124] : memref<32x128xbf16, #tpu.memory_space<vmem>>, vector<32x128xbf16>
    %cst_125 = arith.constant dense<0.000000e+00> : vector<8x128xf32>
    %342 = tpu.matmul %340, %341, %cst_125 {dimension_numbers = #tpu.dot_dimension_numbers<[1], [0], [0], [1], [0, 0, 1, 1], [], []>} : vector<8x32xbf16>, vector<32x128xbf16>, vector<8x128xf32> -> vector<8x128xf32>
    %343 = arith.addf %339, %342 : vector<8x128xf32>
    %344 = vector.extract_strided_slice %343 {offsets = [0, 0], sizes = [8, 32], strides = [1, 1]} : vector<8x128xf32> to vector<8x32xf32>
    %345 = arith.negf %344 : vector<8x32xf32>
    %346 = math.exp %345 : vector<8x32xf32>
    %cst_126 = arith.constant 1.000000e+00 : f32
    %347 = vector.broadcast %cst_126 : f32 to vector<8x32xf32>
    %348 = arith.addf %347, %346 : vector<8x32xf32>
    %349 = arith.divf %347, %348 : vector<8x32xf32>
    %350 = vector.extract_strided_slice %343 {offsets = [0, 32], sizes = [8, 32], strides = [1, 1]} : vector<8x128xf32> to vector<8x32xf32>
    %351 = arith.negf %350 : vector<8x32xf32>
    %352 = math.exp %351 : vector<8x32xf32>
    %cst_127 = arith.constant 1.000000e+00 : f32
    %353 = vector.broadcast %cst_127 : f32 to vector<8x32xf32>
    %354 = arith.addf %353, %352 : vector<8x32xf32>
    %355 = arith.divf %353, %354 : vector<8x32xf32>
    %356 = vector.extract_strided_slice %343 {offsets = [0, 64], sizes = [8, 32], strides = [1, 1]} : vector<8x128xf32> to vector<8x32xf32>
    %357 = math.tanh %356 : vector<8x32xf32>
    %358 = vector.extract_strided_slice %343 {offsets = [0, 96], sizes = [8, 32], strides = [1, 1]} : vector<8x128xf32> to vector<8x32xf32>
    %359 = arith.negf %358 : vector<8x32xf32>
    %360 = math.exp %359 : vector<8x32xf32>
    %cst_128 = arith.constant 1.000000e+00 : f32
    %361 = vector.broadcast %cst_128 : f32 to vector<8x32xf32>
    %362 = arith.addf %361, %360 : vector<8x32xf32>
    %363 = arith.divf %361, %362 : vector<8x32xf32>
    %364 = arith.mulf %355, %303 : vector<8x32xf32>
    %365 = arith.mulf %349, %357 : vector<8x32xf32>
    %366 = arith.addf %364, %365 : vector<8x32xf32>
    %367 = math.tanh %366 : vector<8x32xf32>
    %368 = arith.mulf %363, %367 : vector<8x32xf32>
    %369 = arith.truncf %368 : vector<8x32xf32> to vector<8x32xbf16>
    %c40_129 = arith.constant 40 : index
    %c0_130 = arith.constant 0 : index
    %370 = vector.load %arg13[%c40_129, %c0_130] : memref<64x32xbf16, #tpu.memory_space<vmem>>, vector<8x32xbf16>
    tpu.vector_store %arg13[%c40_129, %c0_130], %369 {strides = array<i32>} : memref<64x32xbf16, #tpu.memory_space<vmem>>, vector<8x32xbf16>,
    %c40_131 = arith.constant 40 : index
    %c0_132 = arith.constant 0 : index
    %371 = vector.load %arg15[%c40_131, %c0_132] : memref<64x128xf32, #tpu.memory_space<vmem>>, vector<8x128xf32>
    %372 = arith.truncf %337 : vector<8x32xf32> to vector<8x32xbf16>
    %c0_133 = arith.constant 0 : index
    %c0_134 = arith.constant 0 : index
    %373 = vector.load %arg5[%c0_133, %c0_134] : memref<32x128xbf16, #tpu.memory_space<vmem>>, vector<32x128xbf16>
    %cst_135 = arith.constant dense<0.000000e+00> : vector<8x128xf32>
    %374 = tpu.matmul %372, %373, %cst_135 {dimension_numbers = #tpu.dot_dimension_numbers<[1], [0], [0], [1], [0, 0, 1, 1], [], []>} : vector<8x32xbf16>, vector<32x128xbf16>, vector<8x128xf32> -> vector<8x128xf32>
    %375 = arith.addf %371, %374 : vector<8x128xf32>
    %376 = vector.extract_strided_slice %375 {offsets = [0, 0], sizes = [8, 32], strides = [1, 1]} : vector<8x128xf32> to vector<8x32xf32>
    %377 = arith.negf %376 : vector<8x32xf32>
    %378 = math.exp %377 : vector<8x32xf32>
    %cst_136 = arith.constant 1.000000e+00 : f32
    %379 = vector.broadcast %cst_136 : f32 to vector<8x32xf32>
    %380 = arith.addf %379, %378 : vector<8x32xf32>
    %381 = arith.divf %379, %380 : vector<8x32xf32>
    %382 = vector.extract_strided_slice %375 {offsets = [0, 32], sizes = [8, 32], strides = [1, 1]} : vector<8x128xf32> to vector<8x32xf32>
    %383 = arith.negf %382 : vector<8x32xf32>
    %384 = math.exp %383 : vector<8x32xf32>
    %cst_137 = arith.constant 1.000000e+00 : f32
    %385 = vector.broadcast %cst_137 : f32 to vector<8x32xf32>
    %386 = arith.addf %385, %384 : vector<8x32xf32>
    %387 = arith.divf %385, %386 : vector<8x32xf32>
    %388 = vector.extract_strided_slice %375 {offsets = [0, 64], sizes = [8, 32], strides = [1, 1]} : vector<8x128xf32> to vector<8x32xf32>
    %389 = math.tanh %388 : vector<8x32xf32>
    %390 = vector.extract_strided_slice %375 {offsets = [0, 96], sizes = [8, 32], strides = [1, 1]} : vector<8x128xf32> to vector<8x32xf32>
    %391 = arith.negf %390 : vector<8x32xf32>
    %392 = math.exp %391 : vector<8x32xf32>
    %cst_138 = arith.constant 1.000000e+00 : f32
    %393 = vector.broadcast %cst_138 : f32 to vector<8x32xf32>
    %394 = arith.addf %393, %392 : vector<8x32xf32>
    %395 = arith.divf %393, %394 : vector<8x32xf32>
    %396 = arith.mulf %387, %335 : vector<8x32xf32>
    %397 = arith.mulf %381, %389 : vector<8x32xf32>
    %398 = arith.addf %396, %397 : vector<8x32xf32>
    %399 = math.tanh %398 : vector<8x32xf32>
    %400 = arith.mulf %395, %399 : vector<8x32xf32>
    %c40_139 = arith.constant 40 : index
    %c0_140 = arith.constant 0 : index
    %401 = vector.load %arg8[%c40_139, %c0_140] : memref<64x32xf32, #tpu.memory_space<vmem>>, vector<8x32xf32>
    tpu.vector_store %arg8[%c40_139, %c0_140], %400 {strides = array<i32>} : memref<64x32xf32, #tpu.memory_space<vmem>>, vector<8x32xf32>,
    %c48 = arith.constant 48 : index
    %c0_141 = arith.constant 0 : index
    %402 = vector.load %arg14[%c48, %c0_141] : memref<64x128xf32, #tpu.memory_space<vmem>>, vector<8x128xf32>
    %403 = arith.truncf %368 : vector<8x32xf32> to vector<8x32xbf16>
    %c0_142 = arith.constant 0 : index
    %c0_143 = arith.constant 0 : index
    %404 = vector.load %arg3[%c0_142, %c0_143] : memref<32x128xbf16, #tpu.memory_space<vmem>>, vector<32x128xbf16>
    %cst_144 = arith.constant dense<0.000000e+00> : vector<8x128xf32>
    %405 = tpu.matmul %403, %404, %cst_144 {dimension_numbers = #tpu.dot_dimension_numbers<[1], [0], [0], [1], [0, 0, 1, 1], [], []>} : vector<8x32xbf16>, vector<32x128xbf16>, vector<8x128xf32> -> vector<8x128xf32>
    %406 = arith.addf %402, %405 : vector<8x128xf32>
    %407 = vector.extract_strided_slice %406 {offsets = [0, 0], sizes = [8, 32], strides = [1, 1]} : vector<8x128xf32> to vector<8x32xf32>
    %408 = arith.negf %407 : vector<8x32xf32>
    %409 = math.exp %408 : vector<8x32xf32>
    %cst_145 = arith.constant 1.000000e+00 : f32
    %410 = vector.broadcast %cst_145 : f32 to vector<8x32xf32>
    %411 = arith.addf %410, %409 : vector<8x32xf32>
    %412 = arith.divf %410, %411 : vector<8x32xf32>
    %413 = vector.extract_strided_slice %406 {offsets = [0, 32], sizes = [8, 32], strides = [1, 1]} : vector<8x128xf32> to vector<8x32xf32>
    %414 = arith.negf %413 : vector<8x32xf32>
    %415 = math.exp %414 : vector<8x32xf32>
    %cst_146 = arith.constant 1.000000e+00 : f32
    %416 = vector.broadcast %cst_146 : f32 to vector<8x32xf32>
    %417 = arith.addf %416, %415 : vector<8x32xf32>
    %418 = arith.divf %416, %417 : vector<8x32xf32>
    %419 = vector.extract_strided_slice %406 {offsets = [0, 64], sizes = [8, 32], strides = [1, 1]} : vector<8x128xf32> to vector<8x32xf32>
    %420 = math.tanh %419 : vector<8x32xf32>
    %421 = vector.extract_strided_slice %406 {offsets = [0, 96], sizes = [8, 32], strides = [1, 1]} : vector<8x128xf32> to vector<8x32xf32>
    %422 = arith.negf %421 : vector<8x32xf32>
    %423 = math.exp %422 : vector<8x32xf32>
    %cst_147 = arith.constant 1.000000e+00 : f32
    %424 = vector.broadcast %cst_147 : f32 to vector<8x32xf32>
    %425 = arith.addf %424, %423 : vector<8x32xf32>
    %426 = arith.divf %424, %425 : vector<8x32xf32>
    %427 = arith.mulf %418, %366 : vector<8x32xf32>
    %428 = arith.mulf %412, %420 : vector<8x32xf32>
    %429 = arith.addf %427, %428 : vector<8x32xf32>
    %430 = math.tanh %429 : vector<8x32xf32>
    %431 = arith.mulf %426, %430 : vector<8x32xf32>
    %432 = arith.truncf %431 : vector<8x32xf32> to vector<8x32xbf16>
    %c48_148 = arith.constant 48 : index
    %c0_149 = arith.constant 0 : index
    %433 = vector.load %arg13[%c48_148, %c0_149] : memref<64x32xbf16, #tpu.memory_space<vmem>>, vector<8x32xbf16>
    tpu.vector_store %arg13[%c48_148, %c0_149], %432 {strides = array<i32>} : memref<64x32xbf16, #tpu.memory_space<vmem>>, vector<8x32xbf16>,
    %c48_150 = arith.constant 48 : index
    %c0_151 = arith.constant 0 : index
    %434 = vector.load %arg15[%c48_150, %c0_151] : memref<64x128xf32, #tpu.memory_space<vmem>>, vector<8x128xf32>
    %435 = arith.truncf %400 : vector<8x32xf32> to vector<8x32xbf16>
    %c0_152 = arith.constant 0 : index
    %c0_153 = arith.constant 0 : index
    %436 = vector.load %arg5[%c0_152, %c0_153] : memref<32x128xbf16, #tpu.memory_space<vmem>>, vector<32x128xbf16>
    %cst_154 = arith.constant dense<0.000000e+00> : vector<8x128xf32>
    %437 = tpu.matmul %435, %436, %cst_154 {dimension_numbers = #tpu.dot_dimension_numbers<[1], [0], [0], [1], [0, 0, 1, 1], [], []>} : vector<8x32xbf16>, vector<32x128xbf16>, vector<8x128xf32> -> vector<8x128xf32>
    %438 = arith.addf %434, %437 : vector<8x128xf32>
    %439 = vector.extract_strided_slice %438 {offsets = [0, 0], sizes = [8, 32], strides = [1, 1]} : vector<8x128xf32> to vector<8x32xf32>
    %440 = arith.negf %439 : vector<8x32xf32>
    %441 = math.exp %440 : vector<8x32xf32>
    %cst_155 = arith.constant 1.000000e+00 : f32
    %442 = vector.broadcast %cst_155 : f32 to vector<8x32xf32>
    %443 = arith.addf %442, %441 : vector<8x32xf32>
    %444 = arith.divf %442, %443 : vector<8x32xf32>
    %445 = vector.extract_strided_slice %438 {offsets = [0, 32], sizes = [8, 32], strides = [1, 1]} : vector<8x128xf32> to vector<8x32xf32>
    %446 = arith.negf %445 : vector<8x32xf32>
    %447 = math.exp %446 : vector<8x32xf32>
    %cst_156 = arith.constant 1.000000e+00 : f32
    %448 = vector.broadcast %cst_156 : f32 to vector<8x32xf32>
    %449 = arith.addf %448, %447 : vector<8x32xf32>
    %450 = arith.divf %448, %449 : vector<8x32xf32>
    %451 = vector.extract_strided_slice %438 {offsets = [0, 64], sizes = [8, 32], strides = [1, 1]} : vector<8x128xf32> to vector<8x32xf32>
    %452 = math.tanh %451 : vector<8x32xf32>
    %453 = vector.extract_strided_slice %438 {offsets = [0, 96], sizes = [8, 32], strides = [1, 1]} : vector<8x128xf32> to vector<8x32xf32>
    %454 = arith.negf %453 : vector<8x32xf32>
    %455 = math.exp %454 : vector<8x32xf32>
    %cst_157 = arith.constant 1.000000e+00 : f32
    %456 = vector.broadcast %cst_157 : f32 to vector<8x32xf32>
    %457 = arith.addf %456, %455 : vector<8x32xf32>
    %458 = arith.divf %456, %457 : vector<8x32xf32>
    %459 = arith.mulf %450, %398 : vector<8x32xf32>
    %460 = arith.mulf %444, %452 : vector<8x32xf32>
    %461 = arith.addf %459, %460 : vector<8x32xf32>
    %462 = math.tanh %461 : vector<8x32xf32>
    %463 = arith.mulf %458, %462 : vector<8x32xf32>
    %c48_158 = arith.constant 48 : index
    %c0_159 = arith.constant 0 : index
    %464 = vector.load %arg8[%c48_158, %c0_159] : memref<64x32xf32, #tpu.memory_space<vmem>>, vector<8x32xf32>
    tpu.vector_store %arg8[%c48_158, %c0_159], %463 {strides = array<i32>} : memref<64x32xf32, #tpu.memory_space<vmem>>, vector<8x32xf32>,
    %c56 = arith.constant 56 : index
    %c0_160 = arith.constant 0 : index
    %465 = vector.load %arg14[%c56, %c0_160] : memref<64x128xf32, #tpu.memory_space<vmem>>, vector<8x128xf32>
    %466 = arith.truncf %431 : vector<8x32xf32> to vector<8x32xbf16>
    %c0_161 = arith.constant 0 : index
    %c0_162 = arith.constant 0 : index
    %467 = vector.load %arg3[%c0_161, %c0_162] : memref<32x128xbf16, #tpu.memory_space<vmem>>, vector<32x128xbf16>
    %cst_163 = arith.constant dense<0.000000e+00> : vector<8x128xf32>
    %468 = tpu.matmul %466, %467, %cst_163 {dimension_numbers = #tpu.dot_dimension_numbers<[1], [0], [0], [1], [0, 0, 1, 1], [], []>} : vector<8x32xbf16>, vector<32x128xbf16>, vector<8x128xf32> -> vector<8x128xf32>
    %469 = arith.addf %465, %468 : vector<8x128xf32>
    %470 = vector.extract_strided_slice %469 {offsets = [0, 0], sizes = [8, 32], strides = [1, 1]} : vector<8x128xf32> to vector<8x32xf32>
    %471 = arith.negf %470 : vector<8x32xf32>
    %472 = math.exp %471 : vector<8x32xf32>
    %cst_164 = arith.constant 1.000000e+00 : f32
    %473 = vector.broadcast %cst_164 : f32 to vector<8x32xf32>
    %474 = arith.addf %473, %472 : vector<8x32xf32>
    %475 = arith.divf %473, %474 : vector<8x32xf32>
    %476 = vector.extract_strided_slice %469 {offsets = [0, 32], sizes = [8, 32], strides = [1, 1]} : vector<8x128xf32> to vector<8x32xf32>
    %477 = arith.negf %476 : vector<8x32xf32>
    %478 = math.exp %477 : vector<8x32xf32>
    %cst_165 = arith.constant 1.000000e+00 : f32
    %479 = vector.broadcast %cst_165 : f32 to vector<8x32xf32>
    %480 = arith.addf %479, %478 : vector<8x32xf32>
    %481 = arith.divf %479, %480 : vector<8x32xf32>
    %482 = vector.extract_strided_slice %469 {offsets = [0, 64], sizes = [8, 32], strides = [1, 1]} : vector<8x128xf32> to vector<8x32xf32>
    %483 = math.tanh %482 : vector<8x32xf32>
    %484 = vector.extract_strided_slice %469 {offsets = [0, 96], sizes = [8, 32], strides = [1, 1]} : vector<8x128xf32> to vector<8x32xf32>
    %485 = arith.negf %484 : vector<8x32xf32>
    %486 = math.exp %485 : vector<8x32xf32>
    %cst_166 = arith.constant 1.000000e+00 : f32
    %487 = vector.broadcast %cst_166 : f32 to vector<8x32xf32>
    %488 = arith.addf %487, %486 : vector<8x32xf32>
    %489 = arith.divf %487, %488 : vector<8x32xf32>
    %490 = arith.mulf %481, %429 : vector<8x32xf32>
    %491 = arith.mulf %475, %483 : vector<8x32xf32>
    %492 = arith.addf %490, %491 : vector<8x32xf32>
    %493 = math.tanh %492 : vector<8x32xf32>
    %494 = arith.mulf %489, %493 : vector<8x32xf32>
    %495 = arith.truncf %494 : vector<8x32xf32> to vector<8x32xbf16>
    %c56_167 = arith.constant 56 : index
    %c0_168 = arith.constant 0 : index
    %496 = vector.load %arg13[%c56_167, %c0_168] : memref<64x32xbf16, #tpu.memory_space<vmem>>, vector<8x32xbf16>
    tpu.vector_store %arg13[%c56_167, %c0_168], %495 {strides = array<i32>} : memref<64x32xbf16, #tpu.memory_space<vmem>>, vector<8x32xbf16>,
    %c56_169 = arith.constant 56 : index
    %c0_170 = arith.constant 0 : index
    %497 = vector.load %arg15[%c56_169, %c0_170] : memref<64x128xf32, #tpu.memory_space<vmem>>, vector<8x128xf32>
    %498 = arith.truncf %463 : vector<8x32xf32> to vector<8x32xbf16>
    %c0_171 = arith.constant 0 : index
    %c0_172 = arith.constant 0 : index
    %499 = vector.load %arg5[%c0_171, %c0_172] : memref<32x128xbf16, #tpu.memory_space<vmem>>, vector<32x128xbf16>
    %cst_173 = arith.constant dense<0.000000e+00> : vector<8x128xf32>
    %500 = tpu.matmul %498, %499, %cst_173 {dimension_numbers = #tpu.dot_dimension_numbers<[1], [0], [0], [1], [0, 0, 1, 1], [], []>} : vector<8x32xbf16>, vector<32x128xbf16>, vector<8x128xf32> -> vector<8x128xf32>
    %501 = arith.addf %497, %500 : vector<8x128xf32>
    %502 = vector.extract_strided_slice %501 {offsets = [0, 0], sizes = [8, 32], strides = [1, 1]} : vector<8x128xf32> to vector<8x32xf32>
    %503 = arith.negf %502 : vector<8x32xf32>
    %504 = math.exp %503 : vector<8x32xf32>
    %cst_174 = arith.constant 1.000000e+00 : f32
    %505 = vector.broadcast %cst_174 : f32 to vector<8x32xf32>
    %506 = arith.addf %505, %504 : vector<8x32xf32>
    %507 = arith.divf %505, %506 : vector<8x32xf32>
    %508 = vector.extract_strided_slice %501 {offsets = [0, 32], sizes = [8, 32], strides = [1, 1]} : vector<8x128xf32> to vector<8x32xf32>
    %509 = arith.negf %508 : vector<8x32xf32>
    %510 = math.exp %509 : vector<8x32xf32>
    %cst_175 = arith.constant 1.000000e+00 : f32
    %511 = vector.broadcast %cst_175 : f32 to vector<8x32xf32>
    %512 = arith.addf %511, %510 : vector<8x32xf32>
    %513 = arith.divf %511, %512 : vector<8x32xf32>
    %514 = vector.extract_strided_slice %501 {offsets = [0, 64], sizes = [8, 32], strides = [1, 1]} : vector<8x128xf32> to vector<8x32xf32>
    %515 = math.tanh %514 : vector<8x32xf32>
    %516 = vector.extract_strided_slice %501 {offsets = [0, 96], sizes = [8, 32], strides = [1, 1]} : vector<8x128xf32> to vector<8x32xf32>
    %517 = arith.negf %516 : vector<8x32xf32>
    %518 = math.exp %517 : vector<8x32xf32>
    %cst_176 = arith.constant 1.000000e+00 : f32
    %519 = vector.broadcast %cst_176 : f32 to vector<8x32xf32>
    %520 = arith.addf %519, %518 : vector<8x32xf32>
    %521 = arith.divf %519, %520 : vector<8x32xf32>
    %522 = arith.mulf %513, %461 : vector<8x32xf32>
    %523 = arith.mulf %507, %515 : vector<8x32xf32>
    %524 = arith.addf %522, %523 : vector<8x32xf32>
    %525 = math.tanh %524 : vector<8x32xf32>
    %526 = arith.mulf %521, %525 : vector<8x32xf32>
    %c56_177 = arith.constant 56 : index
    %c0_178 = arith.constant 0 : index
    %527 = vector.load %arg8[%c56_177, %c0_178] : memref<64x32xf32, #tpu.memory_space<vmem>>, vector<8x32xf32>
    tpu.vector_store %arg8[%c56_177, %c0_178], %526 {strides = array<i32>} : memref<64x32xf32, #tpu.memory_space<vmem>>, vector<8x32xf32>,
    %c0_179 = arith.constant 0 : index
    %c0_180 = arith.constant 0 : index
    %528 = vector.load %arg9[%c0_179, %c0_180] : memref<8x32xf32, #tpu.memory_space<vmem>>, vector<8x32xf32>
    tpu.vector_store %arg9[%c0_179, %c0_180], %494 {strides = array<i32>} : memref<8x32xf32, #tpu.memory_space<vmem>>, vector<8x32xf32>,
    %c0_181 = arith.constant 0 : index
    %c0_182 = arith.constant 0 : index
    %529 = vector.load %arg10[%c0_181, %c0_182] : memref<8x32xf32, #tpu.memory_space<vmem>>, vector<8x32xf32>
    tpu.vector_store %arg10[%c0_181, %c0_182], %492 {strides = array<i32>} : memref<8x32xf32, #tpu.memory_space<vmem>>, vector<8x32xf32>,
    %c0_183 = arith.constant 0 : index
    %c0_184 = arith.constant 0 : index
    %530 = vector.load %arg11[%c0_183, %c0_184] : memref<8x32xf32, #tpu.memory_space<vmem>>, vector<8x32xf32>
    tpu.vector_store %arg11[%c0_183, %c0_184], %526 {strides = array<i32>} : memref<8x32xf32, #tpu.memory_space<vmem>>, vector<8x32xf32>,
    %c0_185 = arith.constant 0 : index
    %c0_186 = arith.constant 0 : index
    %531 = vector.load %arg12[%c0_185, %c0_186] : memref<8x32xf32, #tpu.memory_space<vmem>>, vector<8x32xf32>
    tpu.vector_store %arg12[%c0_185, %c0_186], %524 {strides = array<i32>} : memref<8x32xf32, #tpu.memory_space<vmem>>, vector<8x32xf32>,
    return
  }
  func.func @transform_0(%arg0: i32) -> (i32, i32) {
    %c0_i32 = arith.constant 0 : i32
    %c0_i32_0 = arith.constant 0 : i32
    return %arg0, %c0_i32 : i32, i32
  }
  func.func @transform_1(%arg0: i32) -> (i32, i32) {
    %c0_i32 = arith.constant 0 : i32
    %c0_i32_0 = arith.constant 0 : i32
    %c0_i32_1 = arith.constant 0 : i32
    return %c0_i32, %c0_i32_0 : i32, i32
  }
  func.func @transform_2(%arg0: i32) -> (i32, i32) {
    %c0_i32 = arith.constant 0 : i32
    %c0_i32_0 = arith.constant 0 : i32
    %c0_i32_1 = arith.constant 0 : i32
    return %c0_i32, %c0_i32_0 : i32, i32
  }
  func.func @transform_3(%arg0: i32) -> (i32, i32) {
    %c0_i32 = arith.constant 0 : i32
    %c0_i32_0 = arith.constant 0 : i32
    %c0_i32_1 = arith.constant 0 : i32
    return %c0_i32, %c0_i32_0 : i32, i32
  }
  func.func @transform_4(%arg0: i32) -> (i32, i32) {
    %c0_i32 = arith.constant 0 : i32
    %c0_i32_0 = arith.constant 0 : i32
    %c0_i32_1 = arith.constant 0 : i32
    return %c0_i32, %c0_i32_0 : i32, i32
  }
  func.func @transform_5(%arg0: i32) -> (i32, i32) {
    %c0_i32 = arith.constant 0 : i32
    %c0_i32_0 = arith.constant 0 : i32
    %c0_i32_1 = arith.constant 0 : i32
    return %c0_i32, %c0_i32_0 : i32, i32
  }
  func.func @transform_6(%arg0: i32) -> (i32, i32) {
    %c0_i32 = arith.constant 0 : i32
    %c0_i32_0 = arith.constant 0 : i32
    %c0_i32_1 = arith.constant 0 : i32
    return %c0_i32, %c0_i32_0 : i32, i32
  }
  func.func @transform_7(%arg0: i32) -> (i32, i32) {
    %c0_i32 = arith.constant 0 : i32
    %c0_i32_0 = arith.constant 0 : i32
    return %arg0, %c0_i32 : i32, i32
  }
}

</mosaic_0001>

<bundles_post_ra>
// kernel: a_call__.1
= control target key start
LH: loop header
LB: loop body
LE: loop exit
PB: predicated region body
PF: predicated region fallthrough
CT: control target
= control target key end

     0   :  { %s2665_s24 = smov 0   ;;  %s3142_s0 = inlined_call_operand.vmem [shape: bf16[128,32], index: 0, kind: input, shape index: {}]   ;;  %s3143_s1 = inlined_call_operand.vmem [shape: bf16[32,128], index: 1, kind: input, shape index: {}]   ;;  %s3144_s2 = inlined_call_operand.vmem [shape: bf16[32,128], index: 2, kind: input, shape index: {}]   ;;  %s3145_s3 = inlined_call_operand.vmem [shape: bf16[32,128], index: 3, kind: input, shape index: {}]   ;;  %s3146_s4 = inlined_call_operand.vmem [shape: bf16[32,128], index: 4, kind: input, shape index: {}]   ;;  %s3147_s5 = inlined_call_operand.vmem [shape: f32[1,128], index: 5, kind: input, shape index: {}]   ;;  %s3148_s6 = inlined_call_operand.vmem [shape: f32[1,128], index: 6, kind: input, shape index: {}]   ;;  %s3149_s7 = inlined_call_operand.vmem [shape: f32[128,32], index: 7, kind: output, shape index: {}]  }
   0x1 LB: > { %s2120_s25 = sadd.s32 4294967295, %s2616_s24   ;;  %p2124_p0 = scmp.ge.s32.totalorder %s2616_s24, 1  ;;  %s2616_s24 = sphi %s2665_s24, %s17_s24  }
   0x2   : > { %p238_p1 = scmp.lt.s32.totalorder %s2616_s24, 3 }
   0x4   : > { %p239_p2 = pnand %p2124_p0, %p238_p1 }
   0x5   : > { %s2125_s26 = sshll.u32 (!%p239_p2), %s2120_s25, 3  ;;  %p2129_p4 = scmp.ne.s32.totalorder (!%p239_p2), %s2120_s25, 0 }
   0x6   : > { %242 = sbr.rel (%p239_p2) target bundleno = 5693 (0x163d), region = 48  ;;  %p271_p3 = scmp.lt.s32.totalorder (!%p239_p2), %s2125_s26, 15 }
   0xd   : > { %s3151_s26 = smov (!%p271_p3, %s2125_s26), 15  ;;  %286 = sbr.rel (%p2129_p4) target bundleno = 20 (0x14), region = 52 }
   0xe   : > { %s2126_s27 = sshll.u32 %s3151_s26, 2  ;;  %s2128_s28 = sshll.u32 %s3151_s26, 3  ;;  %vm287_vm0 = vcmask (!%p2129_p4), 261120   ;;  %v2618_v0 = vmov (!%p2129_p4), 0.0  }
   0xf   : > { %s2676_s8 = scalar_lea.vmem %s3142_s0, %s2126_s27  ;;  %s2681_s11 = scalar_lea.vmem %s3149_s7, %s2128_s28  ;;  %288 = vst.msk [vmem:[#allocation2] sm:$0xff] (!%p2129_p4), %vm287_vm0, %v2618_v0  ;;  %289 = vst.msk [vmem:[#allocation3] sm:$0xff] (!%p2129_p4), %vm287_vm0, %v2618_v0 }
  0x14 PF: > { %p2130_p5 = scmp.ne.s32.totalorder %s2120_s25, 1 }
  0x15   : > { %vm294_vm1 = vcmask (!%p2130_p5), 261120   ;;  %v2619_v1 = vmov (!%p2130_p5), 0.0  }
  0x16   : > { %293 = sbr.rel (%p2130_p5) target bundleno = 29 (0x1d), region = 56  ;;  %295 = vst.msk [vmem:[#allocation4] sm:$0xff] (!%p2130_p5), %vm294_vm1, %v2619_v1  ;;  %296 = vst.msk [vmem:[#allocation5] sm:$0xff] (!%p2130_p5), %vm294_vm1, %v2619_v1 }
  0x1d PF: > { %v2442_v2 = vld [vmem:[%s3145_s3] sm:$0xff]   ;;  %v2444_v4 = vld [vmem:[%s3145_s3 + $0x8] sm:$0xff]   ;;  %vm324_vm2 = vcmask 261120   ;;  %v2620_v11 = vmov 0.0   ;;  %v299_v13 = vld [vmem:[#allocation6 + $0x10] sm:$0xff]  ;;  %s2621_s29 = smov 32  }
  0x1e   : > { %v2443_v3 = vld [vmem:[%s3143_s1] sm:$0xff]   ;;  %2275 = vmatprep.subr.bf16.mxu0 %v2442_v2  ;;  %v2445_v5 = vld [vmem:[%s3143_s1 + $0x8] sm:$0xff]   ;;  %v2450_v14 = vld [vmem:[%s2676_s8 + $0x10] sm:$0xff]   ;;  %vm2622_vm3 = vmmov 0   ;;  %s2623_s12 = smov 64   ;;  %vm645_vm4 = vcmask 257024  }
  0x1f   : > { %2287 = vmatprep.subr.bf16.mxu1 %v2443_v3  ;;  %2276 = vmatpush3.bf16.msra.mxu0 %v2442_v2  ;;  %v297_v6 = vld [vmem:[#allocation6] sm:$0xff]  ;;  %v298_v8 = vld [vmem:[#allocation6 + $0x8] sm:$0xff]  ;;  %v300_v16 = vld [vmem:[#allocation6 + $0x18] sm:$0xff]  ;;  %vm833_vm5 = vcmask 261124  }
  0x20   : > { %2288 = vmatpush3.bf16.msra.mxu1 %v2443_v3  ;;  %2277 = vmatprep.subr.bf16.mxu0 %v2444_v4  ;;  %v2446_v7 = vld [vmem:[%s2676_s8] sm:$0xff]   ;;  %v2447_v9 = vld [vmem:[%s2676_s8 + $0x8] sm:$0xff]   ;;  %v2451_v17 = vld [vmem:[%s2676_s8 + $0x18] sm:$0xff]  }
  0x21   : > { %2289 = vmatprep.subr.bf16.mxu1 %v2445_v5  ;;  %2279 = vmatprep.mubr.msk.bf16.mxu0 %vm324_vm2, %v297_v6  ;;  %v2448_v10 = vld [vmem:[%s3144_s2] sm:$0xff]   ;;  %v2452_v15 = vld [vmem:[%s3144_s2 + $0x8] sm:$0xff]   ;;  %v548_v21 = vld [vmem:[#allocation4] sm:$0xff] }
  0x22   : > { %2291 = vmatprep.mubr.msk.bf16.mxu1 %vm324_vm2, %v2446_v7  ;;  %v2449_v12 = vld [vmem:[%s3146_s4] sm:$0xff]   ;;  %v2453_v18 = vld [vmem:[%s3146_s4 + $0x8] sm:$0xff]   ;;  %v648_v23 = vpack.c.bf16 %v548_v21, %v548_v21  ;;  %v549_v6 = vld [vmem:[#allocation5] sm:$0xff] }
  0x23   : > { %2278 = vmatpush3.bf16.msra.mxu0 %v2444_v4  ;;  %v547_v19 = vld [vmem:[#allocation3] sm:$0xff]  ;;  %v546_v20 = vld [vmem:[#allocation2] sm:$0xff] }
  0x24   : > { %2290 = vmatpush3.bf16.msra.mxu1 %v2445_v5  ;;  %2299 = vmatprep.subr.bf16.mxu0 %v2620_v11  ;;  %v551_v22 = vpack.c.bf16 %v546_v20, %v546_v20  ;;  %v2131_v24 = vld [vmem:[%s3148_s6] ss:$0 sm:$0xff] }
  0x25   : > { %2307 = vmatprep.subr.bf16.mxu1 %v2620_v11  ;;  %620 = vrot.lane.b32.xlu1 %v547_v19, %s2621_s29  ;;  %v2138_v25 = vld [vmem:[%s3147_s5] ss:$0 sm:$0xff] }
  0x26   : > { %2280 = vmatmul.mubr.msk.bf16.vlgmr.msra.gmra.mrb[0].mxu0 %vm324_vm2, %v298_v8 }
  0x27   : > { %2292 = vmatmul.mubr.msk.bf16.vlgmr.msra.gmra.mrb[0].mxu1 %vm324_vm2, %v2447_v9  ;;  %2300 = vmatpush3.bf16.msra.mxu0 %v2448_v10 }
  0x28   : > { %2308 = vmatpush3.bf16.msra.mxu1 %v2449_v12  ;;  %2283 = vmatprep.mubr.msk.bf16.mxu0 %vm324_vm2, %v299_v13 }
  0x29   : > { %2295 = vmatprep.mubr.msk.bf16.mxu1 %vm324_vm2, %v2450_v14  ;;  %2301 = vmatprep.subr.bf16.mxu0 %v2620_v11 }
  0x2a   : > { %2309 = vmatprep.subr.bf16.mxu1 %v2620_v11 }
  0x2b   : > { %2302 = vmatpush3.bf16.msra.mxu0 %v2452_v15 }
  0x2c   : > { %2310 = vmatpush3.bf16.msra.mxu1 %v2453_v18  ;;  %2315 = vmatprep.subr.bf16.mxu0 %v2620_v11 }
  0x2d   : > { %2323 = vmatprep.subr.bf16.mxu1 %v2620_v11 }
  0x2e   : > { %2284 = vmatmul.mubr.msk.bf16.gmra.mrb[4].mxu0 %vm324_vm2, %v300_v16 }
  0x2f   : > { %2296 = vmatmul.mubr.msk.bf16.gmra.mrb[4].mxu1 %vm324_vm2, %v2451_v17  ;;  %2303 = vmatprep.mubr.msk.bf16.mxu0 %vm2622_vm3, %v2620_v11 }
  0x30   : > { %2311 = vmatprep.mubr.msk.bf16.mxu1 %vm2622_vm3, %v2620_v11 }
  0x36   : > { %2304 = vmatmul.mubr.msk.bf16.vlgmr.msra.gmra.mrb[8].mxu0 %vm324_vm2, %v551_v22 }
  0x37   : > { %2312 = vmatmul.mubr.msk.bf16.vlgmr.msra.gmra.mrb[8].mxu1 %vm324_vm2, %v648_v23  ;;  %2319 = vmatprep.mubr.msk.bf16.mxu0 %vm2622_vm3, %v2620_v11 }
  0x38   : > { %2327 = vmatprep.mubr.msk.bf16.mxu1 %vm2622_vm3, %v2620_v11 }
  0x97   : > { %v621_v20 = vpop.permute.xlu1 %620 }
  0xf9   : > { %v2281_v26 = vpop.f32.mrb[0].mxu0 }
  0xfa   : > { %v2742_v27 = vadd.f32 %v2281_v26, %v2131_v24  ;;  %v371_v28 = vpop.f32.mrb[1].mxu0  ;;  %v2293_v29 = vpop.f32.mrb[0].mxu1 }
  0xfb   : > { %v2282_v30 = vpop.f32.mrb[2].mxu0  ;;  %v2744_v31 = vadd.f32 %v2293_v29, %v2138_v25  ;;  %v507_v32 = vpop.f32.mrb[1].mxu1  ;;  %v372_v57 = vadd.f32 %v2131_v24, %v371_v28  ;;  %v2454_v29 = vld [vmem:[%s3144_s2] sm:$0xff]  }
  0xfc   : > { %v2746_v33 = vadd.f32 %v2282_v30, %v2131_v24  ;;  %v374_v34 = vpop.f32.mrb[3].mxu0  ;;  %v2294_v35 = vpop.f32.mrb[2].mxu1  ;;  %v508_v56 = vadd.f32 %v2138_v25, %v507_v32  ;;  %v2456_v30 = vld [vmem:[%s3146_s4] sm:$0xff]   ;;  %2316 = vmatpush3.bf16.msra.mxu0 %v2454_v29  ;;  %v2455_v32 = vld [vmem:[%s3144_s2 + $0x8] sm:$0xff]  }
  0xfd   : > { %v2748_v36 = vadd.f32 %v2131_v24, %v374_v34  ;;  %v2750_v37 = vadd.f32 %v2294_v35, %v2138_v25  ;;  %v510_v38 = vpop.f32.mrb[3].mxu1  ;;  %2324 = vmatpush3.bf16.msra.mxu1 %v2456_v30  ;;  %2317 = vmatprep.subr.bf16.mxu0 %v2620_v11 }
  0xfe   : > { %v2752_v39 = vadd.f32 %v2138_v25, %v510_v38  ;;  %2325 = vmatprep.subr.bf16.mxu1 %v2620_v11  ;;  %v2457_v38 = vld [vmem:[%s3146_s4 + $0x8] sm:$0xff]  }
 0x100   : > { %2318 = vmatpush3.bf16.msra.mxu0 %v2455_v32 }
 0x101   : > { %v2285_v40 = vpop.f32.mrb[4].mxu0  ;;  %2331 = vmatprep.subr.bf16.mxu0 %v2620_v11  ;;  %2326 = vmatpush3.bf16.msra.mxu1 %v2457_v38 }
 0x102   : > { %v2754_v41 = vadd.f32 %v2285_v40, %v2131_v24  ;;  %v387_v42 = vpop.f32.mrb[5].mxu0  ;;  %v2297_v43 = vpop.f32.mrb[4].mxu1  ;;  %2339 = vmatprep.subr.bf16.mxu1 %v2620_v11 }
 0x103   : > { %v2756_v44 = vadd.f32 %v2131_v24, %v387_v42  ;;  %v2286_v45 = vpop.f32.mrb[6].mxu0  ;;  %v2758_v46 = vadd.f32 %v2297_v43, %v2138_v25  ;;  %v523_v47 = vpop.f32.mrb[5].mxu1 }
 0x104   : > { %v2760_v48 = vadd.f32 %v2286_v45, %v2131_v24  ;;  %v390_v49 = vpop.f32.mrb[7].mxu0  ;;  %v2762_v50 = vadd.f32 %v2138_v25, %v523_v47  ;;  %v2298_v51 = vpop.f32.mrb[6].mxu1 }
 0x105   : > { %v2764_v52 = vadd.f32 %v2131_v24, %v390_v49  ;;  %v2766_v53 = vadd.f32 %v2298_v51, %v2138_v25  ;;  %v526_v54 = vpop.f32.mrb[7].mxu1 }
 0x106   : > { %v2768_v55 = vadd.f32 %v2138_v25, %v526_v54 }
 0x109   : > { %v605_v58 = vpop.f32.mrb[8].mxu0 }
 0x10a   : > { %v611_v59 = vadd.f32 %v605_v58, %v508_v56  ;;  %v702_v60 = vpop.f32.mrb[8].mxu1  ;;  %v2305_v61 = vpop.f32.mrb[9].mxu0 }
 0x10b   : > { %v708_v62 = vadd.f32 %v702_v60, %v372_v57  ;;  %v608_v63 = vpop.f32.mrb[10].mxu0  ;;  %v2313_v0 = vpop.f32.mrb[9].mxu1 }
 0x10c   : > { %2482 = vtanh.f32 %v611_v59  ;;  %v2306_v1 = vpop.f32.mrb[11].mxu0  ;;  %v705_v2 = vpop.f32.mrb[10].mxu1  ;;  %v2152_v7 = vmul.f32 -1.442695, %v611_v59 }
 0x10d   : > { %v2314_v3 = vpop.f32.mrb[11].mxu1  ;;  %2484 = vtanh.f32 %v708_v62  ;;  %v2156_v8 = vmul.f32 -1.442695, %v708_v62 }
 0x10e   : > { %2486 = vpow2.f32 %v2152_v7 }
 0x10f   : > { %2488 = vpow2.f32 %v2156_v8 }
 0x116   : > { %v2483_v4 = vpop.eup %2482 }
 0x117   : > { %625 = vrot.lane.b32.xlu0 %v2483_v4, %s2623_s12  ;;  %v2485_v5 = vpop.eup %2484 }
 0x118   : > { %v2487_v9 = vpop.eup %2486 }
 0x119   : > { %v615_v10 = vadd.f32 1.0, %v2487_v9  ;;  %v2489_v12 = vpop.eup %2488 }
 0x11a   : > { %v712_v13 = vadd.f32 1.0, %v2489_v12 }
 0x11b   : > { %722 = vrot.lane.b32.xlu0 %v2485_v5, %s2623_s12  ;;  %2490 = vrcp.f32 %v615_v10 }
 0x11c   : > { %2492 = vrcp.f32 %v712_v13 }
 0x11f   : > { %717 = vrot.lane.b32.xlu0 %v549_v6, %s2621_s29 }
 0x125   : > { %v2491_v14 = vpop.eup %2490 }
 0x126   : > { %v2493_v17 = vpop.eup %2492  ;;  %v623_v21 = vmul.f32 %v2491_v14, %v621_v20 }
 0x189   : > { %v626_v15 = vpop.permute.xlu0 %625 }
 0x18a   : > { %v628_v16 = vmul.f32 %v2491_v14, %v626_v15 }
 0x18c   : > { %630 = vrot.lane.b32.xlu1 %v628_v16, %s2621_s29 }
 0x18d   : > { %v723_v18 = vpop.permute.xlu0 %722 }
 0x18e   : > { %v725_v19 = vmul.f32 %v2493_v17, %v723_v18 }
 0x190   : > { %727 = vrot.lane.b32.xlu1 %v725_v19, %s2621_s29 }
 0x191   : > { %v718_v22 = vpop.permute.xlu0 %717 }
 0x192   : > { %v720_v25 = vmul.f32 %v2493_v17, %v718_v22  ;;  %v2460_v22 = vld [vmem:[%s3146_s4] sm:$0xff]  }
 0x1fe   : > { %v631_v23 = vpop.permute.xlu1 %630 }
 0x1ff   : > { %v2775_v24 = vadd.f32 %v631_v23, %v623_v21  ;;  %v2458_v21 = vld [vmem:[%s3144_s2] sm:$0xff]   ;;  %v2459_v23 = vld [vmem:[%s3144_s2 + $0x8] sm:$0xff]  }
 0x201   : > { %2494 = vtanh.f32 %v2775_v24 }
 0x202   : > { %v728_v26 = vpop.permute.xlu1 %727 }
 0x203   : > { %v2778_v28 = vadd.f32 %v728_v26, %v720_v25  ;;  %v2461_v26 = vld [vmem:[%s3146_s4 + $0x8] sm:$0xff]  }
 0x205   : > { %2496 = vtanh.f32 %v2778_v28 }
 0x20b   : > { %v2495_v34 = vpop.eup %2494 }
 0x20c   : > { %636 = vrot.lane.b32.xlu0 %v2495_v34, %s2623_s12 }
 0x20f   : > { %v2497_v35 = vpop.eup %2496 }
 0x210   : > { %733 = vrot.lane.b32.xlu1 %v2497_v35, %s2623_s12 }
 0x27e   : > { %v637_v40 = vpop.permute.xlu0 %636 }
 0x27f   : > { %v639_v42 = vmul.f32 %v2491_v14, %v637_v40 }
 0x281   : > { %v640_v43 = vpack.c.bf16 %v639_v42, %v639_v42 }
 0x282   : > { %v734_v45 = vpop.permute.xlu1 %733 }
 0x283   : > { %v2799_v47 = vmul.f32 %v2493_v17, %v734_v45  ;;  %642 = vrot.lane.b32.xlu0 %v640_v43, %s2621_s29 }
 0x285   : > { %v836_v49 = vpack.c.bf16 %v2799_v47, %v2799_v47 }
 0x287   : > { %842 = vrot.lane.b32.xlu1 %v836_v49, %s2621_s29 }
 0x2f5   : > { %v643_v51 = vpop.permute.xlu0 %642 }
 0x2f6   : > { %646 = vst.msk [vmem:[#allocation6] sm:$0xf] %vm645_vm4, %v643_v51  ;;  %2320 = vmatmul.mubr.msk.bf16.vlgmr.msra.gmra.mrb[12].mxu0 %vm324_vm2, %v643_v51 }
 0x2f7   : > { %2335 = vmatprep.mubr.msk.bf16.mxu0 %vm2622_vm3, %v2620_v11  ;;  %2332 = vmatpush3.bf16.msra.mxu0 %v2458_v21 }
 0x2f8   : > { %2333 = vmatprep.subr.bf16.mxu0 %v2620_v11 }
 0x2f9   : > { %v843_v54 = vpop.permute.xlu1 %842 }
 0x2fa   : > { %2328 = vmatmul.mubr.msk.bf16.vlgmr.msra.gmra.mrb[12].mxu1 %vm324_vm2, %v843_v54 }
 0x2fb   : > { %2343 = vmatprep.mubr.msk.bf16.mxu1 %vm2622_vm3, %v2620_v11  ;;  %2340 = vmatpush3.bf16.msra.mxu1 %v2460_v22 }
 0x2fc   : > { %2341 = vmatprep.subr.bf16.mxu1 %v2620_v11  ;;  %2334 = vmatpush3.bf16.msra.mxu0 %v2459_v23 }
 0x2fd   : > { %2347 = vmatprep.subr.bf16.mxu0 %v2620_v11 }
 0x2ff   : > { %2342 = vmatpush3.bf16.msra.mxu1 %v2461_v26 }
 0x300   : > { %2355 = vmatprep.subr.bf16.mxu1 %v2620_v11 }
 0x3c9   : > { %v796_v56 = vpop.f32.mrb[12].mxu0 }
 0x3ca   : > { %v802_v57 = vadd.f32 %v796_v56, %v2752_v39  ;;  %v2321_v58 = vpop.f32.mrb[13].mxu0 }
 0x3cb   : > { %v799_v59 = vpop.f32.mrb[14].mxu0 }
 0x3cc   : > { %2498 = vtanh.f32 %v802_v57  ;;  %v2322_v60 = vpop.f32.mrb[15].mxu0  ;;  %v2160_v4 = vmul.f32 -1.442695, %v802_v57 }
 0x3cd   : > { %v893_v61 = vpop.f32.mrb[12].mxu1 }
 0x3ce   : > { %v899_v62 = vadd.f32 %v893_v61, %v2748_v36  ;;  %v2329_v63 = vpop.f32.mrb[13].mxu1 }
 0x3cf   : > { %v896_v0 = vpop.f32.mrb[14].mxu1 }
 0x3d0   : > { %2500 = vtanh.f32 %v899_v62  ;;  %v2330_v1 = vpop.f32.mrb[15].mxu1  ;;  %v2164_v39 = vmul.f32 -1.442695, %v899_v62 }
 0x3d1   : > { %2502 = vpow2.f32 %v2160_v4 }
 0x3d2   : > { %2504 = vpow2.f32 %v2164_v39 }
 0x3d6   : > { %v2499_v2 = vpop.eup %2498 }
 0x3d7   : > { %812 = vrot.lane.b32.xlu0 %v2499_v2, %s2623_s12 }
 0x3da   : > { %v2501_v3 = vpop.eup %2500 }
 0x3db   : > { %909 = vrot.lane.b32.xlu1 %v2501_v3, %s2623_s12  ;;  %v2503_v5 = vpop.eup %2502 }
 0x3dc   : > { %v806_v6 = vadd.f32 1.0, %v2503_v5  ;;  %v2505_v7 = vpop.eup %2504 }
 0x3dd   : > { %v903_v8 = vadd.f32 1.0, %v2505_v7 }
 0x3de   : > { %2506 = vrcp.f32 %v806_v6 }
 0x3df   : > { %2508 = vrcp.f32 %v903_v8 }
 0x3e8   : > { %v2507_v36 = vpop.eup %2506 }
 0x3e9   : > { %v2509_v12 = vpop.eup %2508  ;;  %v810_v15 = vmul.f32 %v2507_v36, %v2775_v24 }
 0x3ea   : > { %v907_v18 = vmul.f32 %v2509_v12, %v2778_v28 }
 0x449   : > { %v813_v9 = vpop.permute.xlu0 %812 }
 0x44a   : > { %v815_v10 = vmul.f32 %v2507_v36, %v813_v9 }
 0x44c   : > { %817 = vrot.lane.b32.xlu0 %v815_v10, %s2621_s29 }
 0x44d   : > { %v910_v13 = vpop.permute.xlu1 %909 }
 0x44e   : > { %v912_v14 = vmul.f32 %v2509_v12, %v910_v13  ;;  %v2462_v13 = vld [vmem:[%s3144_s2] sm:$0xff]  }
 0x450   : > { %914 = vrot.lane.b32.xlu1 %v912_v14, %s2621_s29  ;;  %v2464_v14 = vld [vmem:[%s3146_s4] sm:$0xff]  }
 0x4be   : > { %v818_v16 = vpop.permute.xlu0 %817 }
 0x4bf   : > { %v2819_v17 = vadd.f32 %v818_v16, %v810_v15  ;;  %v2463_v15 = vld [vmem:[%s3144_s2 + $0x8] sm:$0xff]  }
 0x4c1   : > { %2510 = vtanh.f32 %v2819_v17 }
 0x4c2   : > { %v915_v19 = vpop.permute.xlu1 %914 }
 0x4c3   : > { %v2823_v20 = vadd.f32 %v915_v19, %v907_v18  ;;  %v2465_v18 = vld [vmem:[%s3146_s4 + $0x8] sm:$0xff]  }
 0x4c5   : > { %2512 = vtanh.f32 %v2823_v20 }
 0x4cb   : > { %v2511_v24 = vpop.eup %2510 }
 0x4cc   : > { %823 = vrot.lane.b32.xlu0 %v2511_v24, %s2623_s12 }
 0x4cf   : > { %v2513_v25 = vpop.eup %2512 }
 0x4d0   : > { %920 = vrot.lane.b32.xlu1 %v2513_v25, %s2623_s12 }
 0x53e   : > { %v824_v28 = vpop.permute.xlu0 %823 }
 0x53f   : > { %v826_v29 = vmul.f32 %v2507_v36, %v824_v28 }
 0x541   : > { %v2844_v30 = vpack.c.bf16 %v826_v29, %v826_v29 }
 0x542   : > { %v921_v32 = vpop.permute.xlu1 %920 }
 0x543   : > { %v2846_v34 = vmul.f32 %v2509_v12, %v921_v32  ;;  %934 = vrot.lane.b32.xlu0 %v2844_v30, %s2621_s29 }
 0x545   : > { %v1023_v35 = vpack.c.bf16 %v2846_v34, %v2846_v34 }
 0x547   : > { %1029 = vrot.lane.b32.xlu1 %v1023_v35, %s2621_s29 }
 0x5b5   : > { %v935_v38 = vpop.permute.xlu0 %934 }
 0x5b6   : > { %2336 = vmatmul.mubr.msk.bf16.vlgmr.msra.gmra.mrb[16].mxu0 %vm324_vm2, %v935_v38 }
 0x5b7   : > { %2351 = vmatprep.mubr.msk.bf16.mxu0 %vm2622_vm3, %v2620_v11  ;;  %2348 = vmatpush3.bf16.msra.mxu0 %v2462_v13 }
 0x5b8   : > { %2349 = vmatprep.subr.bf16.mxu0 %v2620_v11 }
 0x5b9   : > { %v1030_v40 = vpop.permute.xlu1 %1029 }
 0x5ba   : > { %2344 = vmatmul.mubr.msk.bf16.vlgmr.msra.gmra.mrb[16].mxu1 %vm324_vm2, %v1030_v40 }
 0x5bb   : > { %2359 = vmatprep.mubr.msk.bf16.mxu1 %vm2622_vm3, %v2620_v11  ;;  %2356 = vmatpush3.bf16.msra.mxu1 %v2464_v14 }
 0x5bc   : > { %2357 = vmatprep.subr.bf16.mxu1 %v2620_v11  ;;  %2350 = vmatpush3.bf16.msra.mxu0 %v2463_v15 }
 0x5bd   : > { %2363 = vmatprep.subr.bf16.mxu0 %v2620_v11 }
 0x5bf   : > { %2358 = vmatpush3.bf16.msra.mxu1 %v2465_v18 }
 0x5c0   : > { %2371 = vmatprep.subr.bf16.mxu1 %v2620_v11 }
 0x689   : > { %v985_v42 = vpop.f32.mrb[16].mxu0 }
 0x68a   : > { %v991_v43 = vadd.f32 %v985_v42, %v2744_v31  ;;  %v2337_v45 = vpop.f32.mrb[17].mxu0 }
 0x68b   : > { %v988_v49 = vpop.f32.mrb[18].mxu0 }
 0x68c   : > { %2514 = vtanh.f32 %v991_v43  ;;  %v2338_v51 = vpop.f32.mrb[19].mxu0  ;;  %v2168_v62 = vmul.f32 -1.442695, %v991_v43 }
 0x68d   : > { %v1080_v54 = vpop.f32.mrb[16].mxu1 }
 0x68e   : > { %v1086_v56 = vadd.f32 %v1080_v54, %v2742_v27  ;;  %v2345_v57 = vpop.f32.mrb[17].mxu1 }
 0x68f   : > { %v1083_v58 = vpop.f32.mrb[18].mxu1 }
 0x690   : > { %2516 = vtanh.f32 %v1086_v56  ;;  %v2346_v59 = vpop.f32.mrb[19].mxu1  ;;  %v2172_v31 = vmul.f32 -1.442695, %v1086_v56 }
 0x691   : > { %2518 = vpow2.f32 %v2168_v62 }
 0x692   : > { %2520 = vpow2.f32 %v2172_v31 }
 0x696   : > { %v2515_v60 = vpop.eup %2514 }
 0x697   : > { %1001 = vrot.lane.b32.xlu0 %v2515_v60, %s2623_s12 }
 0x69a   : > { %v2517_v61 = vpop.eup %2516 }
 0x69b   : > { %1096 = vrot.lane.b32.xlu1 %v2517_v61, %s2623_s12  ;;  %v2519_v63 = vpop.eup %2518 }
 0x69c   : > { %v995_v0 = vadd.f32 1.0, %v2519_v63  ;;  %v2521_v1 = vpop.eup %2520 }
 0x69d   : > { %v1090_v2 = vadd.f32 1.0, %v2521_v1 }
 0x69e   : > { %2522 = vrcp.f32 %v995_v0 }
 0x69f   : > { %2524 = vrcp.f32 %v1090_v2 }
 0x6a8   : > { %v2523_v27 = vpop.eup %2522 }
 0x6a9   : > { %v2525_v39 = vpop.eup %2524  ;;  %v999_v7 = vmul.f32 %v2523_v27, %v2819_v17 }
 0x6aa   : > { %v1094_v9 = vmul.f32 %v2525_v39, %v2823_v20 }
 0x709   : > { %v1002_v3 = vpop.permute.xlu0 %1001 }
 0x70a   : > { %v1004_v4 = vmul.f32 %v2523_v27, %v1002_v3 }
 0x70c   : > { %1006 = vrot.lane.b32.xlu0 %v1004_v4, %s2621_s29 }
 0x70d   : > { %v1097_v5 = vpop.permute.xlu1 %1096 }
 0x70e   : > { %v1099_v6 = vmul.f32 %v2525_v39, %v1097_v5  ;;  %v2466_v5 = vld [vmem:[%s3144_s2] sm:$0xff]  }
 0x710   : > { %1101 = vrot.lane.b32.xlu1 %v1099_v6, %s2621_s29  ;;  %v2468_v6 = vld [vmem:[%s3146_s4] sm:$0xff]  }
 0x77e   : > { %v1007_v8 = vpop.permute.xlu0 %1006 }
 0x77f   : > { %v2866_v36 = vadd.f32 %v1007_v8, %v999_v7  ;;  %v2467_v7 = vld [vmem:[%s3144_s2 + $0x8] sm:$0xff]  }
 0x781   : > { %2526 = vtanh.f32 %v2866_v36 }
 0x782   : > { %v1102_v10 = vpop.permute.xlu1 %1101 }
 0x783   : > { %v2870_v12 = vadd.f32 %v1102_v10, %v1094_v9  ;;  %v2469_v9 = vld [vmem:[%s3146_s4 + $0x8] sm:$0xff]  }
 0x785   : > { %2528 = vtanh.f32 %v2870_v12 }
 0x78b   : > { %v2527_v16 = vpop.eup %2526 }
 0x78c   : > { %1012 = vrot.lane.b32.xlu0 %v2527_v16, %s2623_s12 }
 0x78f   : > { %v2529_v17 = vpop.eup %2528 }
 0x790   : > { %1107 = vrot.lane.b32.xlu1 %v2529_v17, %s2623_s12 }
 0x7fe   : > { %v1013_v19 = vpop.permute.xlu0 %1012 }
 0x7ff   : > { %v1015_v20 = vmul.f32 %v2523_v27, %v1013_v19 }
 0x801   : > { %v1016_v21 = vpack.c.bf16 %v1015_v20, %v1015_v20 }
 0x802   : > { %v1108_v22 = vpop.permute.xlu1 %1107 }
 0x803   : > { %v2891_v23 = vmul.f32 %v2525_v39, %v1108_v22  ;;  %1018 = vrot.lane.b32.xlu0 %v1016_v21, %s2621_s29 }
 0x805   : > { %v1209_v24 = vpack.c.bf16 %v2891_v23, %v2891_v23 }
 0x807   : > { %1215 = vrot.lane.b32.xlu1 %v1209_v24, %s2621_s29 }
 0x875   : > { %v1019_v25 = vpop.permute.xlu0 %1018 }
 0x876   : > { %1021 = vst.msk [vmem:[#allocation6 + $0x8] sm:$0xf] %vm645_vm4, %v1019_v25  ;;  %2352 = vmatmul.mubr.msk.bf16.vlgmr.msra.gmra.mrb[20].mxu0 %vm324_vm2, %v1019_v25 }
 0x877   : > { %2367 = vmatprep.mubr.msk.bf16.mxu0 %vm2622_vm3, %v2620_v11  ;;  %2364 = vmatpush3.bf16.msra.mxu0 %v2466_v5 }
 0x878   : > { %2365 = vmatprep.subr.bf16.mxu0 %v2620_v11 }
 0x879   : > { %v1216_v26 = vpop.permute.xlu1 %1215 }
 0x87a   : > { %2360 = vmatmul.mubr.msk.bf16.vlgmr.msra.gmra.mrb[20].mxu1 %vm324_vm2, %v1216_v26 }
 0x87b   : > { %2375 = vmatprep.mubr.msk.bf16.mxu1 %vm2622_vm3, %v2620_v11  ;;  %2372 = vmatpush3.bf16.msra.mxu1 %v2468_v6 }
 0x87c   : > { %2373 = vmatprep.subr.bf16.mxu1 %v2620_v11  ;;  %2366 = vmatpush3.bf16.msra.mxu0 %v2467_v7 }
 0x87d   : > { %2379 = vmatprep.subr.bf16.mxu0 %v2620_v11 }
 0x87f   : > { %2374 = vmatpush3.bf16.msra.mxu1 %v2469_v9 }
 0x880   : > { %2387 = vmatprep.subr.bf16.mxu1 %v2620_v11 }
 0x949   : > { %v1170_v28 = vpop.f32.mrb[20].mxu0 }
 0x94a   : > { %v1176_v29 = vadd.f32 %v1170_v28, %v2750_v37  ;;  %v2353_v32 = vpop.f32.mrb[21].mxu0 }
 0x94b   : > { %v1173_v35 = vpop.f32.mrb[22].mxu0 }
 0x94c   : > { %2530 = vtanh.f32 %v1176_v29  ;;  %v2354_v38 = vpop.f32.mrb[23].mxu0  ;;  %v2176_v56 = vmul.f32 -1.442695, %v1176_v29 }
 0x94d   : > { %v1266_v40 = vpop.f32.mrb[20].mxu1 }
 0x94e   : > { %v1272_v42 = vadd.f32 %v1266_v40, %v2746_v33  ;;  %v2361_v43 = vpop.f32.mrb[21].mxu1 }
 0x94f   : > { %v1269_v45 = vpop.f32.mrb[22].mxu1 }
 0x950   : > { %2532 = vtanh.f32 %v1272_v42  ;;  %v2362_v49 = vpop.f32.mrb[23].mxu1  ;;  %v2180_v37 = vmul.f32 -1.442695, %v1272_v42 }
 0x951   : > { %2534 = vpow2.f32 %v2176_v56 }
 0x952   : > { %2536 = vpow2.f32 %v2180_v37 }
 0x956   : > { %v2531_v51 = vpop.eup %2530 }
 0x957   : > { %1186 = vrot.lane.b32.xlu0 %v2531_v51, %s2623_s12 }
 0x95a   : > { %v2533_v54 = vpop.eup %2532 }
 0x95b   : > { %1282 = vrot.lane.b32.xlu1 %v2533_v54, %s2623_s12  ;;  %v2535_v57 = vpop.eup %2534 }
 0x95c   : > { %v1180_v58 = vadd.f32 1.0, %v2535_v57  ;;  %v2537_v59 = vpop.eup %2536 }
 0x95d   : > { %v1276_v60 = vadd.f32 1.0, %v2537_v59 }
 0x95e   : > { %2538 = vrcp.f32 %v1180_v58 }
 0x95f   : > { %2540 = vrcp.f32 %v1276_v60 }
 0x968   : > { %v2539_v33 = vpop.eup %2538 }
 0x969   : > { %v2541_v31 = vpop.eup %2540  ;;  %v1184_v1 = vmul.f32 %v2539_v33, %v2866_v36 }
 0x96a   : > { %v1280_v3 = vmul.f32 %v2541_v31, %v2870_v12 }
 0x9c9   : > { %v1187_v61 = vpop.permute.xlu0 %1186 }
 0x9ca   : > { %v1189_v62 = vmul.f32 %v2539_v33, %v1187_v61 }
 0x9cc   : > { %1191 = vrot.lane.b32.xlu0 %v1189_v62, %s2621_s29 }
 0x9cd   : > { %v1283_v63 = vpop.permute.xlu1 %1282 }
 0x9ce   : > { %v1285_v0 = vmul.f32 %v2541_v31, %v1283_v63  ;;  %v2472_v63 = vld [vmem:[%s3146_s4] sm:$0xff]  }
 0x9d0   : > { %1287 = vrot.lane.b32.xlu1 %v1285_v0, %s2621_s29  ;;  %v2471_v0 = vld [vmem:[%s3144_s2 + $0x8] sm:$0xff]  }
 0xa3e   : > { %v1192_v2 = vpop.permute.xlu0 %1191 }
 0xa3f   : > { %v2911_v27 = vadd.f32 %v1192_v2, %v1184_v1 }
 0xa41   : > { %2542 = vtanh.f32 %v2911_v27 }
 0xa42   : > { %v1288_v4 = vpop.permute.xlu1 %1287 }
 0xa43   : > { %v2915_v39 = vadd.f32 %v1288_v4, %v1280_v3 }
 0xa45   : > { %2544 = vtanh.f32 %v2915_v39 }
 0xa4b   : > { %v2543_v8 = vpop.eup %2542 }
 0xa4c   : > { %1197 = vrot.lane.b32.xlu0 %v2543_v8, %s2623_s12 }
 0xa4f   : > { %v2545_v36 = vpop.eup %2544 }
 0xa50   : > { %1293 = vrot.lane.b32.xlu1 %v2545_v36, %s2623_s12 }
 0xabe   : > { %v1198_v10 = vpop.permute.xlu0 %1197 }
 0xabf   : > { %v1200_v12 = vmul.f32 %v2539_v33, %v1198_v10 }
 0xac1   : > { %v2936_v13 = vpack.c.bf16 %v1200_v12, %v1200_v12 }
 0xac2   : > { %v1294_v14 = vpop.permute.xlu1 %1293 }
 0xac3   : > { %v2938_v15 = vmul.f32 %v2541_v31, %v1294_v14  ;;  %1307 = vrot.lane.b32.xlu0 %v2936_v13, %s2621_s29  ;;  %v2470_v31 = vld [vmem:[%s3144_s2] sm:$0xff]  }
 0xac5   : > { %v1396_v16 = vpack.c.bf16 %v2938_v15, %v2938_v15 }
 0xac7   : > { %1402 = vrot.lane.b32.xlu1 %v1396_v16, %s2621_s29 }
 0xb35   : > { %v1308_v17 = vpop.permute.xlu0 %1307 }
 0xb36   : > { %2368 = vmatmul.mubr.msk.bf16.vlgmr.msra.gmra.mrb[24].mxu0 %vm324_vm2, %v1308_v17 }
 0xb37   : > { %2383 = vmatprep.mubr.msk.bf16.mxu0 %vm2622_vm3, %v2620_v11  ;;  %2380 = vmatpush3.bf16.msra.mxu0 %v2470_v31 }
 0xb38   : > { %2381 = vmatprep.subr.bf16.mxu0 %v2620_v11 }
 0xb39   : > { %v1403_v18 = vpop.permute.xlu1 %1402 }
 0xb3a   : > { %2376 = vmatmul.mubr.msk.bf16.vlgmr.msra.gmra.mrb[24].mxu1 %vm324_vm2, %v1403_v18 }
 0xb3b   : > { %2391 = vmatprep.mubr.msk.bf16.mxu1 %vm2622_vm3, %v2620_v11  ;;  %2388 = vmatpush3.bf16.msra.mxu1 %v2472_v63 }
 0xb3c   : > { %2389 = vmatprep.subr.bf16.mxu1 %v2620_v11  ;;  %2382 = vmatpush3.bf16.msra.mxu0 %v2471_v0 }
 0xb3d   : > { %2395 = vmatprep.subr.bf16.mxu0 %v2620_v11 }
 0xc09   : > { %v1358_v19 = vpop.f32.mrb[24].mxu0 }
 0xc0a   : > { %v1364_v20 = vadd.f32 %v1358_v19, %v2762_v50  ;;  %v2369_v21 = vpop.f32.mrb[25].mxu0 }
 0xc0b   : > { %v1361_v22 = vpop.f32.mrb[26].mxu0 }
 0xc0c   : > { %2546 = vtanh.f32 %v1364_v20  ;;  %v2370_v24 = vpop.f32.mrb[27].mxu0  ;;  %v2184_v40 = vmul.f32 -1.442695, %v1364_v20 }
 0xc0d   : > { %v1453_v25 = vpop.f32.mrb[24].mxu1 }
 0xc0e   : > { %v1459_v26 = vadd.f32 %v1453_v25, %v2756_v44  ;;  %v2377_v28 = vpop.f32.mrb[25].mxu1 }
 0xc0f   : > { %v1456_v29 = vpop.f32.mrb[26].mxu1 }
 0xc10   : > { %2548 = vtanh.f32 %v1459_v26  ;;  %v2378_v32 = vpop.f32.mrb[27].mxu1  ;;  %v2188_v50 = vmul.f32 -1.442695, %v1459_v26 }
 0xc11   : > { %2550 = vpow2.f32 %v2184_v40 }
 0xc12   : > { %2552 = vpow2.f32 %v2188_v50 }
 0xc16   : > { %v2547_v35 = vpop.eup %2546 }
 0xc17   : > { %1374 = vrot.lane.b32.xlu0 %v2547_v35, %s2623_s12 }
 0xc1a   : > { %v2549_v38 = vpop.eup %2548 }
 0xc1b   : > { %1469 = vrot.lane.b32.xlu1 %v2549_v38, %s2623_s12  ;;  %v2551_v42 = vpop.eup %2550 }
 0xc1c   : > { %v1368_v43 = vadd.f32 1.0, %v2551_v42  ;;  %v2553_v45 = vpop.eup %2552 }
 0xc1d   : > { %v1463_v49 = vadd.f32 1.0, %v2553_v45 }
 0xc1e   : > { %2554 = vrcp.f32 %v1368_v43 }
 0xc1f   : > { %2556 = vrcp.f32 %v1463_v49 }
 0xc28   : > { %v2555_v44 = vpop.eup %2554 }
 0xc29   : > { %v2557_v56 = vpop.eup %2556  ;;  %v1372_v58 = vmul.f32 %v2555_v44, %v2911_v27  ;;  %v2473_v27 = vld [vmem:[%s3146_s4 + $0x8] sm:$0xff]  }
 0xc2a   : > { %v1467_v33 = vmul.f32 %v2557_v56, %v2915_v39  ;;  %2390 = vmatpush3.bf16.msra.mxu1 %v2473_v27 }
 0xc2b   : > { %2403 = vmatprep.subr.bf16.mxu1 %v2620_v11 }
 0xc89   : > { %v1375_v51 = vpop.permute.xlu0 %1374 }
 0xc8a   : > { %v1377_v54 = vmul.f32 %v2555_v44, %v1375_v51 }
 0xc8c   : > { %1379 = vrot.lane.b32.xlu0 %v1377_v54, %s2621_s29 }
 0xc8d   : > { %v1470_v37 = vpop.permute.xlu1 %1469 }
 0xc8e   : > { %v1472_v57 = vmul.f32 %v2557_v56, %v1470_v37  ;;  %v2476_v37 = vld [vmem:[%s3146_s4] sm:$0xff]  }
 0xc90   : > { %1474 = vrot.lane.b32.xlu1 %v1472_v57, %s2621_s29  ;;  %v2475_v57 = vld [vmem:[%s3144_s2 + $0x8] sm:$0xff]  }
 0xcfe   : > { %v1380_v59 = vpop.permute.xlu0 %1379 }
 0xcff   : > { %v2958_v60 = vadd.f32 %v1380_v59, %v1372_v58 }
 0xd01   : > { %2558 = vtanh.f32 %v2958_v60 }
 0xd02   : > { %v1475_v61 = vpop.permute.xlu1 %1474 }
 0xd03   : > { %v2962_v62 = vadd.f32 %v1475_v61, %v1467_v33 }
 0xd05   : > { %2560 = vtanh.f32 %v2962_v62 }
 0xd0b   : > { %v2559_v1 = vpop.eup %2558 }
 0xd0c   : > { %1385 = vrot.lane.b32.xlu0 %v2559_v1, %s2623_s12 }
 0xd0f   : > { %v2561_v2 = vpop.eup %2560 }
 0xd10   : > { %1480 = vrot.lane.b32.xlu1 %v2561_v2, %s2623_s12 }
 0xd7e   : > { %v1386_v3 = vpop.permute.xlu0 %1385 }
 0xd7f   : > { %v1388_v4 = vmul.f32 %v2555_v44, %v1386_v3 }
 0xd81   : > { %v1389_v39 = vpack.c.bf16 %v1388_v4, %v1388_v4 }
 0xd82   : > { %v1481_v5 = vpop.permute.xlu1 %1480 }
 0xd83   : > { %v2983_v6 = vmul.f32 %v2557_v56, %v1481_v5  ;;  %1391 = vrot.lane.b32.xlu0 %v1389_v39, %s2621_s29  ;;  %v2474_v56 = vld [vmem:[%s3144_s2] sm:$0xff]  }
 0xd85   : > { %v1582_v7 = vpack.c.bf16 %v2983_v6, %v2983_v6 }
 0xd87   : > { %1588 = vrot.lane.b32.xlu1 %v1582_v7, %s2621_s29 }
 0xdf5   : > { %v1392_v8 = vpop.permute.xlu0 %1391 }
 0xdf6   : > { %1394 = vst.msk [vmem:[#allocation6 + $0x10] sm:$0xf] %vm645_vm4, %v1392_v8  ;;  %2384 = vmatmul.mubr.msk.bf16.vlgmr.msra.gmra.mrb[28].mxu0 %vm324_vm2, %v1392_v8 }
 0xdf7   : > { %2399 = vmatprep.mubr.msk.bf16.mxu0 %vm2622_vm3, %v2620_v11  ;;  %2396 = vmatpush3.bf16.msra.mxu0 %v2474_v56 }
 0xdf8   : > { %2397 = vmatprep.subr.bf16.mxu0 %v2620_v11 }
 0xdf9   : > { %v1589_v36 = vpop.permute.xlu1 %1588 }
 0xdfa   : > { %2392 = vmatmul.mubr.msk.bf16.vlgmr.msra.gmra.mrb[28].mxu1 %vm324_vm2, %v1589_v36 }
 0xdfb   : > { %2407 = vmatprep.mubr.msk.bf16.mxu1 %vm2622_vm3, %v2620_v11  ;;  %2404 = vmatpush3.bf16.msra.mxu1 %v2476_v37 }
 0xdfc   : > { %2405 = vmatprep.subr.bf16.mxu1 %v2620_v11  ;;  %2398 = vmatpush3.bf16.msra.mxu0 %v2475_v57 }
 0xdfd   : > { %2411 = vmatprep.subr.bf16.mxu0 %v2620_v11 }
 0xec9   : > { %v1543_v9 = vpop.f32.mrb[28].mxu0 }
 0xeca   : > { %v1549_v10 = vadd.f32 %v1543_v9, %v2768_v55  ;;  %v2385_v12 = vpop.f32.mrb[29].mxu0 }
 0xecb   : > { %v1546_v14 = vpop.f32.mrb[30].mxu0 }
 0xecc   : > { %2562 = vtanh.f32 %v1549_v10  ;;  %v2386_v16 = vpop.f32.mrb[31].mxu0  ;;  %v2192_v25 = vmul.f32 -1.442695, %v1549_v10 }
 0xecd   : > { %v1639_v17 = vpop.f32.mrb[28].mxu1 }
 0xece   : > { %v1645_v18 = vadd.f32 %v1639_v17, %v2764_v52  ;;  %v2393_v19 = vpop.f32.mrb[29].mxu1 }
 0xecf   : > { %v1642_v20 = vpop.f32.mrb[30].mxu1 }
 0xed0   : > { %2564 = vtanh.f32 %v1645_v18  ;;  %v2394_v21 = vpop.f32.mrb[31].mxu1  ;;  %v2196_v55 = vmul.f32 -1.442695, %v1645_v18 }
 0xed1   : > { %2566 = vpow2.f32 %v2192_v25 }
 0xed2   : > { %2568 = vpow2.f32 %v2196_v55 }
 0xed6   : > { %v2563_v22 = vpop.eup %2562 }
 0xed7   : > { %1559 = vrot.lane.b32.xlu0 %v2563_v22, %s2623_s12 }
 0xeda   : > { %v2565_v24 = vpop.eup %2564 }
 0xedb   : > { %1655 = vrot.lane.b32.xlu1 %v2565_v24, %s2623_s12  ;;  %v2567_v26 = vpop.eup %2566 }
 0xedc   : > { %v1553_v28 = vadd.f32 1.0, %v2567_v26  ;;  %v2569_v29 = vpop.eup %2568 }
 0xedd   : > { %v1649_v32 = vadd.f32 1.0, %v2569_v29 }
 0xede   : > { %2570 = vrcp.f32 %v1553_v28 }
 0xedf   : > { %2572 = vrcp.f32 %v1649_v32 }
 0xee8   : > { %v2571_v52 = vpop.eup %2570 }
 0xee9   : > { %v2573_v40 = vpop.eup %2572  ;;  %v1557_v43 = vmul.f32 %v2571_v52, %v2958_v60  ;;  %v2477_v60 = vld [vmem:[%s3146_s4 + $0x8] sm:$0xff]  }
 0xeea   : > { %v1653_v44 = vmul.f32 %v2573_v40, %v2962_v62  ;;  %2406 = vmatpush3.bf16.msra.mxu1 %v2477_v60 }
 0xeeb   : > { %2419 = vmatprep.subr.bf16.mxu1 %v2620_v11 }
 0xf49   : > { %v1560_v35 = vpop.permute.xlu0 %1559 }
 0xf4a   : > { %v1562_v38 = vmul.f32 %v2571_v52, %v1560_v35 }
 0xf4c   : > { %1564 = vrot.lane.b32.xlu0 %v1562_v38, %s2621_s29  ;;  %v2478_v38 = vld [vmem:[%s3144_s2] sm:$0xff]  }
 0xf4d   : > { %v1656_v50 = vpop.permute.xlu1 %1655 }
 0xf4e   : > { %v1658_v42 = vmul.f32 %v2573_v40, %v1656_v50  ;;  %v2479_v50 = vld [vmem:[%s3144_s2 + $0x8] sm:$0xff]  }
 0xf50   : > { %1660 = vrot.lane.b32.xlu1 %v1658_v42, %s2621_s29 }
 0xfbe   : > { %v1565_v45 = vpop.permute.xlu0 %1564 }
 0xfbf   : > { %v3003_v49 = vadd.f32 %v1565_v45, %v1557_v43  ;;  %v2481_v45 = vld [vmem:[%s3146_s4 + $0x8] sm:$0xff]  }
 0xfc1   : > { %2574 = vtanh.f32 %v3003_v49 }
 0xfc2   : > { %v1661_v51 = vpop.permute.xlu1 %1660 }
 0xfc3   : > { %v3007_v54 = vadd.f32 %v1661_v51, %v1653_v44 }
 0xfc5   : > { %2576 = vtanh.f32 %v3007_v54 }
 0xfcb   : > { %v2575_v58 = vpop.eup %2574 }
 0xfcc   : > { %1570 = vrot.lane.b32.xlu0 %v2575_v58, %s2623_s12 }
 0xfcf   : > { %v2577_v59 = vpop.eup %2576 }
 0xfd0   : > { %1666 = vrot.lane.b32.xlu1 %v2577_v59, %s2623_s12 }
0x103e   : > { %v1571_v33 = vpop.permute.xlu0 %1570 }
0x103f   : > { %v1573_v61 = vmul.f32 %v2571_v52, %v1571_v33 }
0x1041   : > { %v3028_v62 = vpack.c.bf16 %v1573_v61, %v1573_v61 }
0x1042   : > { %v1667_v31 = vpop.permute.xlu1 %1666 }
0x1043   : > { %v3030_v63 = vmul.f32 %v2573_v40, %v1667_v31  ;;  %1680 = vrot.lane.b32.xlu0 %v3028_v62, %s2621_s29  ;;  %v2480_v40 = vld [vmem:[%s3146_s4] sm:$0xff]  }
0x1045   : > { %v1769_v0 = vpack.c.bf16 %v3030_v63, %v3030_v63 }
0x1047   : > { %1775 = vrot.lane.b32.xlu1 %v1769_v0, %s2621_s29 }
0x10b5   : > { %v1681_v1 = vpop.permute.xlu0 %1680 }
0x10b6   : > { %2400 = vmatmul.mubr.msk.bf16.vlgmr.msra.gmra.mrb[32].mxu0 %vm324_vm2, %v1681_v1 }
0x10b7   : > { %2415 = vmatprep.mubr.msk.bf16.mxu0 %vm2622_vm3, %v2620_v11  ;;  %2412 = vmatpush3.bf16.msra.mxu0 %v2478_v38 }
0x10b8   : > { %2413 = vmatprep.subr.bf16.mxu0 %v2620_v11 }
0x10b9   : > { %v1776_v2 = vpop.permute.xlu1 %1775 }
0x10ba   : > { %2408 = vmatmul.mubr.msk.bf16.vlgmr.msra.gmra.mrb[32].mxu1 %vm324_vm2, %v1776_v2 }
0x10bb   : > { %2423 = vmatprep.mubr.msk.bf16.mxu1 %vm2622_vm3, %v2620_v11  ;;  %2420 = vmatpush3.bf16.msra.mxu1 %v2480_v40 }
0x10bc   : > { %2421 = vmatprep.subr.bf16.mxu1 %v2620_v11  ;;  %2414 = vmatpush3.bf16.msra.mxu0 %v2479_v50 }
0x10bf   : > { %2422 = vmatpush3.bf16.msra.mxu1 %v2481_v45 }
0x1189   : > { %v1731_v27 = vpop.f32.mrb[32].mxu0 }
0x118a   : > { %v1737_v3 = vadd.f32 %v1731_v27, %v2758_v46  ;;  %v2401_v4 = vpop.f32.mrb[33].mxu0 }
0x118b   : > { %v1734_v39 = vpop.f32.mrb[34].mxu0 }
0x118c   : > { %2578 = vtanh.f32 %v1737_v3  ;;  %v2402_v5 = vpop.f32.mrb[35].mxu0  ;;  %v2200_v16 = vmul.f32 -1.442695, %v1737_v3 }
0x118d   : > { %v1826_v7 = vpop.f32.mrb[32].mxu1 }
0x118e   : > { %v1832_v8 = vadd.f32 %v1826_v7, %v2754_v41  ;;  %v2409_v36 = vpop.f32.mrb[33].mxu1 }
0x118f   : > { %v1829_v9 = vpop.f32.mrb[34].mxu1 }
0x1190   : > { %2580 = vtanh.f32 %v1832_v8  ;;  %v2410_v10 = vpop.f32.mrb[35].mxu1  ;;  %v2204_v46 = vmul.f32 -1.442695, %v1832_v8 }
0x1191   : > { %2582 = vpow2.f32 %v2200_v16 }
0x1192   : > { %2584 = vpow2.f32 %v2204_v46 }
0x1196   : > { %v2579_v12 = vpop.eup %2578 }
0x1197   : > { %1747 = vrot.lane.b32.xlu0 %v2579_v12, %s2623_s12 }
0x119a   : > { %v2581_v14 = vpop.eup %2580 }
0x119b   : > { %1842 = vrot.lane.b32.xlu1 %v2581_v14, %s2623_s12  ;;  %v2583_v17 = vpop.eup %2582 }
0x119c   : > { %v1741_v18 = vadd.f32 1.0, %v2583_v17  ;;  %v2585_v19 = vpop.eup %2584 }
0x119d   : > { %v1836_v20 = vadd.f32 1.0, %v2585_v19 }
0x119e   : > { %2586 = vrcp.f32 %v1741_v18 }
0x119f   : > { %2588 = vrcp.f32 %v1836_v20 }
0x11a8   : > { %v2587_v41 = vpop.eup %2586 }
0x11a9   : > { %v2589_v24 = vpop.eup %2588  ;;  %v1745_v26 = vmul.f32 %v2587_v41, %v3003_v49 }
0x11aa   : > { %v1840_v32 = vmul.f32 %v2589_v24, %v3007_v54 }
0x1209   : > { %v1748_v21 = vpop.permute.xlu0 %1747 }
0x120a   : > { %v1750_v22 = vmul.f32 %v2587_v41, %v1748_v21 }
0x120c   : > { %1752 = vrot.lane.b32.xlu0 %v1750_v22, %s2621_s29 }
0x120d   : > { %v1843_v25 = vpop.permute.xlu1 %1842 }
0x120e   : > { %v1845_v55 = vmul.f32 %v2589_v24, %v1843_v25  ;;  %v1203_v25 = vrot.slane %v2936_v13, 4 }
0x1210   : > { %1847 = vrot.lane.b32.xlu1 %v1845_v55, %s2621_s29 }
0x127e   : > { %v1753_v28 = vpop.permute.xlu0 %1752 }
0x127f   : > { %v3050_v29 = vadd.f32 %v1753_v28, %v1745_v26 }
0x1281   : > { %2590 = vtanh.f32 %v3050_v29 }
0x1282   : > { %v1848_v52 = vpop.permute.xlu1 %1847 }
0x1283   : > { %v3054_v35 = vadd.f32 %v1848_v52, %v1840_v32 }
0x1285   : > { %2592 = vtanh.f32 %v3054_v35 }
0x128b   : > { %v2591_v42 = vpop.eup %2590 }
0x128c   : > { %1758 = vrot.lane.b32.xlu0 %v2591_v42, %s2623_s12 }
0x128f   : > { %v2593_v43 = vpop.eup %2592 }
0x1290   : > { %1853 = vrot.lane.b32.xlu1 %v2593_v43, %s2623_s12 }
0x12fe   : > { %v1759_v49 = vpop.permute.xlu0 %1758 }
0x12ff   : > { %v1761_v44 = vmul.f32 %v2587_v41, %v1759_v49 }
0x1301   : > { %v1762_v51 = vpack.c.bf16 %v1761_v44, %v1761_v44 }
0x1302   : > { %v1854_v54 = vpop.permute.xlu1 %1853 }
0x1303   : > { %v3073_v56 = vmul.f32 %v2589_v24, %v1854_v54  ;;  %1764 = vrot.lane.b32.xlu0 %v1762_v51, %s2621_s29  ;;  %v829_v24 = vrot.slane %v2844_v30, 4 }
0x1305   : > { %v1955_v11 = vpack.c.bf16 %v3073_v56, %v3073_v56 }
0x1307   : > { %1961 = vrot.lane.b32.xlu1 %v1955_v11, %s2621_s29 }
0x1375   : > { %v1765_v37 = vpop.permute.xlu0 %1764 }
0x1376   : > { %1767 = vst.msk [vmem:[#allocation6 + $0x18] sm:$0xf] %vm645_vm4, %v1765_v37  ;;  %2416 = vmatmul.mubr.msk.bf16.vlgmr.msra.gmra.mrb[36].mxu0 %vm324_vm2, %v1765_v37 }
0x1379   : > { %v1962_v57 = vpop.permute.xlu1 %1961 }
0x137a   : > { %2424 = vmatmul.mubr.msk.bf16.vlgmr.msra.gmra.mrb[36].mxu1 %vm324_vm2, %v1962_v57 }
0x1449   : > { %v1916_v58 = vpop.f32.mrb[36].mxu0 }
0x144a   : > { %v1922_v59 = vadd.f32 %v1916_v58, %v2766_v53  ;;  %v2417_v60 = vpop.f32.mrb[37].mxu0 }
0x144b   : > { %v1919_v33 = vpop.f32.mrb[38].mxu0 }
0x144c   : > { %2594 = vtanh.f32 %v1922_v59  ;;  %v2418_v61 = vpop.f32.mrb[39].mxu0  ;;  %v2208_v39 = vmul.f32 -1.442695, %v1922_v59 }
0x144d   : > { %v2012_v31 = vpop.f32.mrb[36].mxu1 }
0x144e   : > { %v2018_v0 = vadd.f32 %v2012_v31, %v2760_v48  ;;  %v2425_v1 = vpop.f32.mrb[37].mxu1 }
0x144f   : > { %v2015_v2 = vpop.f32.mrb[38].mxu1 }
0x1450   : > { %2596 = vtanh.f32 %v2018_v0  ;;  %v2426_v27 = vpop.f32.mrb[39].mxu1  ;;  %v2212_v53 = vmul.f32 -1.442695, %v2018_v0 }
0x1451   : > { %2598 = vpow2.f32 %v2208_v39 }
0x1452   : > { %2600 = vpow2.f32 %v2212_v53 }
0x1456   : > { %v2595_v3 = vpop.eup %2594 }
0x1457   : > { %1932 = vrot.lane.b32.xlu0 %v2595_v3, %s2623_s12 }
0x145a   : > { %v2597_v4 = vpop.eup %2596 }
0x145b   : > { %2028 = vrot.lane.b32.xlu1 %v2597_v4, %s2623_s12  ;;  %v2599_v5 = vpop.eup %2598 }
0x145c   : > { %v1926_v7 = vadd.f32 1.0, %v2599_v5  ;;  %v2601_v8 = vpop.eup %2600 }
0x145d   : > { %v2022_v36 = vadd.f32 1.0, %v2601_v8 }
0x145e   : > { %2602 = vrcp.f32 %v1926_v7 }
0x145f   : > { %2604 = vrcp.f32 %v2022_v36 }
0x1468   : > { %v2603_v48 = vpop.eup %2602 }
0x1469   : > { %v2605_v12 = vpop.eup %2604  ;;  %v1930_v46 = vmul.f32 %v2603_v48, %v3050_v29 }
0x146a   : > { %v2026_v19 = vmul.f32 %v2605_v12, %v3054_v35 }
0x14c9   : > { %v1933_v9 = vpop.permute.xlu0 %1932 }
0x14ca   : > { %v1935_v10 = vmul.f32 %v2603_v48, %v1933_v9 }
0x14cc   : > { %1937 = vrot.lane.b32.xlu0 %v1935_v10, %s2621_s29 }
0x14cd   : > { %v2029_v14 = vpop.permute.xlu1 %2028 }
0x14ce   : > { %v2031_v16 = vmul.f32 %v2605_v12, %v2029_v14 }
0x14d0   : > { %2033 = vrot.lane.b32.xlu1 %v2031_v16, %s2621_s29 }
0x153e   : > { %v1938_v17 = vpop.permute.xlu0 %1937 }
0x153f   : > { %v1940_v18 = vadd.f32 %v1938_v17, %v1930_v46 }
0x1541   : > { %2606 = vtanh.f32 %v1940_v18 }
0x1542   : > { %v2034_v20 = vpop.permute.xlu1 %2033 }
0x1543   : > { %v2036_v41 = vadd.f32 %v2034_v20, %v2026_v19 }
0x1545   : > { %2608 = vtanh.f32 %v2036_v41 }
0x154b   : > { %v2607_v21 = vpop.eup %2606 }
0x154c   : > { %1943 = vrot.lane.b32.xlu0 %v2607_v21, %s2623_s12 }
0x154f   : > { %v2609_v22 = vpop.eup %2608 }
0x1550   : > { %738 = vrot.lane.b32.xlu0 %v2799_v47, %s2621_s29  ;;  %2039 = vrot.lane.b32.xlu1 %v2609_v22, %s2623_s12  ;;  %v1576_v47 = vrot.slane %v3028_v62, 4  ;;  %s2624_s12 = smov 96  }
0x1554   : > { %925 = vrot.lane.b32.xlu0 %v2846_v34, %s2621_s29  ;;  %830 = vrot.lane.b32.xlu1 %v829_v24, %s2621_s29 }
0x1558   : > { %1204 = vrot.lane.b32.xlu0 %v1203_v25, %s2621_s29  ;;  %1112 = vrot.lane.b32.xlu1 %v2891_v23, %s2621_s29 }
0x155c   : > { %1485 = vrot.lane.b32.xlu0 %v2983_v6, %s2621_s29  ;;  %1298 = vrot.lane.b32.xlu1 %v2938_v15, %s2621_s29 }
0x1560   : > { %1671 = vrot.lane.b32.xlu0 %v3030_v63, %s2621_s29  ;;  %1577 = vrot.lane.b32.xlu1 %v1576_v47, %s2621_s29 }
0x1564   : > { %1858 = vrot.lane.b32.xlu1 %v3073_v56, %s2621_s29 }
0x15be   : > { %v1944_v30 = vpop.permute.xlu0 %1943 }
0x15bf   : > { %v1946_v34 = vmul.f32 %v2603_v48, %v1944_v30 }
0x15c1   : > { %v1947_v23 = vpack.c.bf16 %v1946_v34, %v1946_v34  ;;  %2049 = vrot.lane.b32.xlu0 %v1946_v34, %s2621_s29 }
0x15c2   : > { %v739_v13 = vpop.permute.xlu0 %738  ;;  %v2040_v6 = vpop.permute.xlu1 %2039 }
0x15c3   : > { %v1949_v55 = vrot.slane %v1947_v23, 4  ;;  %741 = vst.msk [vmem:[%s2681_s11] sm:$0xff] %vm324_vm2, %v739_v13  ;;  %v2042_v15 = vmul.f32 %v2605_v12, %v2040_v6 }
0x15c5   : > { %1950 = vrot.lane.b32.xlu0 %v1949_v55, %s2621_s29  ;;  %2044 = vrot.lane.b32.xlu1 %v2042_v15, %s2621_s29 }
0x15c6   : > { %v926_v62 = vpop.permute.xlu0 %925  ;;  %v831_v63 = vpop.permute.xlu1 %830 }
0x15c7   : > { %928 = vst.msk [vmem:[%s2681_s11 + $0x8] sm:$0xff] %vm324_vm2, %v926_v62 }
0x15c8   : > { %834 = vst.msk [vmem:[#allocation6] sm:$0xf0] %vm833_vm5, %v831_v63 }
0x15c9   : > { %2060 = vrot.lane.b32.xlu0 %v2036_v41, %s2624_s12  ;;  %2054 = vrot.lane.b32.xlu1 %v1940_v18, %s2624_s12 }
0x15ca   : > { %v1205_v26 = vpop.permute.xlu0 %1204  ;;  %v1113_v28 = vpop.permute.xlu1 %1112 }
0x15cb   : > { %1207 = vst.msk [vmem:[#allocation6 + $0x8] sm:$0xf0] %vm833_vm5, %v1205_v26 }
0x15cc   : > { %1115 = vst.msk [vmem:[%s2681_s11 + $0x10] sm:$0xff] %vm324_vm2, %v1113_v28 }
0x15ce   : > { %v1486_v29 = vpop.permute.xlu0 %1485  ;;  %v1299_v32 = vpop.permute.xlu1 %1298 }
0x15cf   : > { %1488 = vst.msk [vmem:[%s2681_s11 + $0x20] sm:$0xff] %vm324_vm2, %v1486_v29  ;;  %1301 = vst.msk [vmem:[%s2681_s11 + $0x18] sm:$0xff] %vm324_vm2, %v1299_v32 }
0x15d2   : > { %v1672_v52 = vpop.permute.xlu0 %1671  ;;  %v1578_v35 = vpop.permute.xlu1 %1577 }
0x15d3   : > { %1674 = vst.msk [vmem:[%s2681_s11 + $0x28] sm:$0xff] %vm324_vm2, %v1672_v52 }
0x15d4   : > { %1580 = vst.msk [vmem:[#allocation6 + $0x10] sm:$0xf0] %vm833_vm5, %v1578_v35 }
0x15d6   : > { %v1859_v38 = vpop.permute.xlu1 %1858 }
0x15d7   : > { %1861 = vst.msk [vmem:[%s2681_s11 + $0x30] sm:$0xff] %vm324_vm2, %v1859_v38 }
0x1633   : > { %v2050_v40 = vpop.permute.xlu0 %2049 }
0x1634   : > { %2052 = vst.msk [vmem:[#allocation2] sm:$0xff] %vm324_vm2, %v2050_v40 }
0x1637   : > { %v1951_v50 = vpop.permute.xlu0 %1950  ;;  %v2045_v42 = vpop.permute.xlu1 %2044 }
0x1638   : > { %1953 = vst.msk [vmem:[#allocation6 + $0x18] sm:$0xf0] %vm833_vm5, %v1951_v50 }
0x1639   : > { %2047 = vst.msk [vmem:[%s2681_s11 + $0x38] sm:$0xff] %vm324_vm2, %v2045_v42  ;;  %2058 = vst.msk [vmem:[#allocation4] sm:$0xff] %vm324_vm2, %v2045_v42 }
0x163b   : > { %v2061_v43 = vpop.permute.xlu0 %2060  ;;  %v2055_v45 = vpop.permute.xlu1 %2054 }
0x163c   : > { %2063 = vst.msk [vmem:[#allocation5] sm:$0xff] %vm324_vm2, %v2061_v43  ;;  %2057 = vst.msk [vmem:[#allocation3] sm:$0xff] %vm324_vm2, %v2055_v45 }
0x163d PF: > { %s17_s24 = sadd.s32 1, %s2616_s24  }
0x163e   : > { %p14_p6 = scmp.ge.s32.totalorder %s17_s24, 4  }
0x1640   :  { %16 = sbr.rel (!%p14_p6) target bundleno = 1 (0x1), region = 86 }

</bundles_post_ra>
